<compile_context>
chip_gen: v7x
topology: tpu7x:2x2x1
jax: 0.10.0
libtpu: 0.0.40
codegen_flags: <defaults>
</compile_context>

<pallas_src>
import functools

import jax
import jax.numpy as jnp
from jax.experimental import pallas as pl
from jax.experimental.pallas import tpu as pltpu

# (kernel_size, dilation) for branch1, branch2, branch3, branch4, branch6 (rate=1)
BRANCH_KD = ((1, 1), (3, 4), (3, 8), (3, 12), (3, 16))
N_BRANCH = len(BRANCH_KD)
N_TAPS = sum(k * k for k, _ in BRANCH_KD)          # 37 depthwise weight slots


def _tap_structure(H, W):
    """Static, per branch: tuple of (tap_slot, di, dj) taps that can touch the image."""
    taps = []
    off = 0
    for k, d in BRANCH_KD:
        half = k // 2
        bt = []
        for i in range(k):
            for j in range(k):
                di, dj = (i - half) * d, (j - half) * d
                if abs(di) < H and abs(dj) < W:    # otherwise the tap reads only zero pad
                    bt.append((off + i * k + j, di, dj))
        taps.append(tuple(bt))
        off += k * k
    return tuple(taps)


# --------------------------------------------------------------------------- kernel

def amaca_kernel(x_ref, tapw_ref, w1_ref, b1_ref, poolw_ref, poolb_ref,
                 wproj_ref, bproj_ref, wz_ref, bz_ref, lng_ref, lnb_ref,
                 wcat_ref, bcat_ref, o_ref, *, H, W, ch, seg, taps):
    HW = H * W
    x = x_ref[0]                                        # (C, HW): channels on rows, HW on lanes

    # flattened spatial index / column index for the dilated-tap boundary masks
    pos = jax.lax.broadcasted_iota(jnp.int32, (1, HW), 1)
    col = pos % W

    # ---- 5 depthwise dilated convs: per-channel taps via XLU lane-rolls + masks ----
    accs = []
    for btaps in taps:                                  # static unroll over branches
        acc = None
        for t, di, dj in btaps:                         # static unroll over valid taps
            s = di * W + dj                             # flattened spatial offset
            src = x if s == 0 else pltpu.roll(x, shift=(-s) % HW, axis=1)
            if di == 0 and dj == 0:
                contrib = tapw_ref[t] * src             # (C,1) * (C,HW)
            else:
                ok = ((pos >= max(0, -di) * W) & (pos < min(H, H - di) * W)
                      & (col >= -dj) & (col < W - dj))  # zero-padding of the conv
                contrib = tapw_ref[t] * jnp.where(ok, src, 0.0)
            acc = contrib if acc is None else acc + contrib
        accs.append(acc)                                # (C, HW)
    acc_all = jnp.concatenate(accs, axis=0)             # (5C, HW)

    # ---- per-branch 1x1 + folded BN + ReLU: ONE block-diagonal dot (dw bias folded) ----
    y_all = jnp.dot(w1_ref[...], acc_all, preferred_element_type=jnp.float32)
    y_all = jnp.maximum(y_all + b1_ref[...], 0.0)       # (5C, HW)

    # ---- ImagePool_1: global max pool -> 1x1 (BN folded) -> ReLU; bilinear == broadcast ----
    pooled = jnp.max(x, axis=1, keepdims=True)          # (C, 1)
    g = jnp.dot(poolw_ref[...], pooled, preferred_element_type=jnp.float32)
    g = jnp.maximum(g + poolb_ref[...], 0.0)            # (C, 1)

    # ---- concat [x, b1..b4, b6, pool] along channels, materialized once ----
    cat = jnp.concatenate([x, y_all, jnp.broadcast_to(g, (g.shape[0], HW))], axis=0)

    # ---- Polarized Self-Attention (parallel variant): ONE stacked projection dot ----
    proj = (jnp.dot(wproj_ref[...], cat, preferred_element_type=jnp.float32)
            + bproj_ref[...])                           # (3*seg+1, HW), seg-aligned rows
    wv = proj[0:ch]                                     # (ch, HW)
    sv = proj[seg:seg + ch]                             # (ch, HW)
    sq = proj[2 * seg:2 * seg + ch]                     # (ch, HW)
    wq = proj[3 * seg:3 * seg + 1]                      # (1, HW)

    # channel attention: softmax over spatial positions
    wq = jnp.exp(wq - jnp.max(wq, axis=1, keepdims=True))
    wq = wq * pl.reciprocal(jnp.sum(wq, axis=1, keepdims=True), approx=True)
    z = jnp.sum(wv * wq, axis=1, keepdims=True)         # (ch, 1)
    cz = jnp.dot(wz_ref[...], z, preferred_element_type=jnp.float32) + bz_ref[...]  # (7C,1)
    mean = jnp.mean(cz, axis=0, keepdims=True)
    var = jnp.mean(jnp.square(cz - mean), axis=0, keepdims=True)
    ch_w = jax.nn.sigmoid((cz - mean) * jax.lax.rsqrt(var + 1e-5)
                          * lng_ref[...] + lnb_ref[...])                 # (7C, 1)

    # spatial attention: avg-pooled query, softmax over its channels
    q = jnp.mean(sq, axis=1, keepdims=True)             # (ch, 1)
    q = jnp.exp(q - jnp.max(q, axis=0, keepdims=True))
    q = q * pl.reciprocal(jnp.sum(q, axis=0, keepdims=True), approx=True)
    sp_w = jax.nn.sigmoid(jnp.sum(sv * q, axis=0, keepdims=True))        # (1, HW)

    # ---- att = cat * (channel_w + spatial_w); conv_cat (1x1 + BN folded) + ReLU ----
    att = cat * (ch_w + sp_w)                            # (7C, HW)
    out = jnp.dot(wcat_ref[...], att, preferred_element_type=jnp.float32) + bcat_ref[...]
    o_ref[0] = jnp.maximum(out, 0.0).astype(o_ref.dtype)  # (C_out, HW), lane-dense store


# --------------------------------------------------------------------------- wrapper

def amaca_forward(x_nchw, params):
    B, C, H, W = x_nchw.shape
    HW = H * W
    c_out = params["poolw"].shape[0]
    c7 = 7 * c_out
    ch = c7 // 2
    seg = ((ch + 7) // 8) * 8
    taps = _tap_structure(H, W)

    x = x_nchw.reshape(B, C, HW)                        # free view (no HBM transpose / pad)

    names = ["tapw", "w1", "b1", "poolw", "poolb", "wproj", "bproj",
             "wz", "bz", "lng", "lnb", "wcat", "bcat"]
    ws = [params[n] for n in names]

    in_specs = [pl.BlockSpec((1, C, HW), lambda b: (b, 0, 0))]
    in_specs += [pl.BlockSpec(w.shape, lambda b, n=w.ndim: (0,) * n) for w in ws]

    n_taps = sum(len(bt) for bt in taps)
    flops = B * (2 * n_taps * C * HW                    # depthwise taps (VPU)
                 + 2 * (N_BRANCH * C) ** 2 * HW         # block-diag branch 1x1
                 + 2 * params["wproj"].shape[0] * c7 * HW   # stacked PSA projections
                 + 2 * c_out * c7 * HW                  # conv_cat
                 + 4 * c7 * HW)                         # attention element-wise
    cost = pl.CostEstimate(
        flops=int(flops),
        transcendentals=int(B * (2 * HW + c7 + 2 * ch)),
        bytes_accessed=int(x.size * 4 + B * sum(w.size * 4 for w in ws)
                           + B * c_out * HW * 4))

    out = pl.pallas_call(
        functools.partial(amaca_kernel, H=H, W=W, ch=ch, seg=seg, taps=taps),
        out_shape=jax.ShapeDtypeStruct((B, c_out, HW), jnp.float32),
        grid=(B,),
        in_specs=in_specs,
        out_specs=pl.BlockSpec((1, c_out, HW), lambda b: (b, 0, 0)),
        compiler_params=pltpu.CompilerParams(dimension_semantics=("parallel",)),
        cost_estimate=cost,
    )(x, *ws)

    return out.reshape(B, c_out, H, W)                  # free view back to NCHW


# --------------------------------------------------------------------------- params

def init_params(key, c_in, c_out):
    assert c_in == c_out, "AMACA's 7*dim_out concat requires dim_in == dim_out"
    keys = iter(jax.random.split(key, 64))

    def nrm(shape, s=0.1):
        return s * jax.random.normal(next(keys), shape, jnp.float32)

    def pos(shape):
        return jax.random.uniform(next(keys), shape, jnp.float32, minval=0.5, maxval=1.5)

    def fold_bn(w, b):
        # inference-mode BatchNorm folded into the preceding 1x1 conv; w is (out, in)
        n = w.shape[0]
        gamma, beta, mean, var = pos((n,)), nrm((n,)), nrm((n,)), pos((n,))
        scale = gamma / jnp.sqrt(var + 1e-5)
        return w * scale[:, None], (b - mean) * scale + beta

    # depthwise taps + per-branch 1x1 (+BN folded), depthwise bias folded through the 1x1
    tapw = jnp.zeros((N_TAPS, c_in, 1), jnp.float32)
    w1 = jnp.zeros((N_BRANCH * c_out, N_BRANCH * c_in), jnp.float32)   # block-diagonal
    b1 = jnp.zeros((N_BRANCH * c_out, 1), jnp.float32)
    off = 0
    for bi, (k, _) in enumerate(BRANCH_KD):
        dw = nrm((k * k, c_in))                          # per-channel tap weights
        dwb = nrm((c_in,))                               # depthwise bias
        wf, bf = fold_bn(nrm((c_out, c_in)), nrm((c_out,)))   # 1x1 conv (bias) + BN
        tapw = tapw.at[off:off + k * k, :, 0].set(dw)
        w1 = w1.at[bi * c_out:(bi + 1) * c_out, bi * c_in:(bi + 1) * c_in].set(wf)
        b1 = b1.at[bi * c_out:(bi + 1) * c_out, 0].set(bf + wf @ dwb)  # fold dw bias
        off += k * k

    # ImagePool_1: 1x1 conv (bias=False) + BN folded
    poolw, poolb = fold_bn(nrm((c_out, c_in)), jnp.zeros((c_out,), jnp.float32))

    # PolarizedSelfAttention (7*c_out channels) + conv_cat, (out, in) orientation.
    # Projection rows are grouped [wv | wsv | wsq | wq] with each segment padded to a
    # sublane multiple so the in-kernel splits are aligned slices.
    c7 = 7 * c_out
    ch = c7 // 2
    seg = ((ch + 7) // 8) * 8
    wproj = jnp.zeros((3 * seg + 1, c7), jnp.float32)
    bproj = jnp.zeros((3 * seg + 1, 1), jnp.float32)
    for o_, n_ in ((0, ch), (seg, ch), (2 * seg, ch), (3 * seg, 1)):
        wproj = wproj.at[o_:o_ + n_, :].set(nrm((n_, c7)))
        bproj = bproj.at[o_:o_ + n_, 0].set(nrm((n_,)))
    wz, bz = nrm((c7, ch)), nrm((c7,))
    lng, lnb = pos((c7,)), nrm((c7,))
    wcat, bcat = fold_bn(nrm((c_out, c7)), nrm((c_out,)))   # conv_cat 1x1 (bias) + BN

    return dict(
        tapw=tapw, w1=w1, b1=b1,
        poolw=poolw, poolb=poolb.reshape(c_out, 1),
        wproj=wproj, bproj=bproj,
        wz=wz, bz=bz.reshape(c7, 1),
        lng=lng.reshape(c7, 1), lnb=lnb.reshape(c7, 1),
        wcat=wcat, bcat=bcat.reshape(c_out, 1),
    )


# --------------------------------------------------------------------------- main

if __name__ == "__main__":
    B, C_IN, H, W = 2, 4, 16, 16
    C_OUT = C_IN  # AMACA only type-checks when dim_in == dim_out

    key = jax.random.PRNGKey(0)
    k_params, k_x = jax.random.split(key)
    params = init_params(k_params, C_IN, C_OUT)
    x_nchw = jax.random.normal(k_x, (B, C_IN, H, W), jnp.float32)

    fwd = jax.jit(amaca_forward)
    out = jax.block_until_ready(fwd(x_nchw, params))

    assert out.shape == (B, C_OUT, H, W)
    assert bool(jnp.all(jnp.isfinite(out)))
    print("KERNEL_OK")
</pallas_src>

<mosaic_0001>
module attributes {stable_mosaic.version = 11 : i64} {
  func.func @amaca_kernel(%arg0: i32, %arg1: memref<1x4x256xf32, #tpu.memory_space<vmem>>, %arg2: memref<37x4x1xf32, #tpu.memory_space<vmem>>, %arg3: memref<20x20xf32, #tpu.memory_space<vmem>>, %arg4: memref<20x1xf32, #tpu.memory_space<vmem>>, %arg5: memref<4x4xf32, #tpu.memory_space<vmem>>, %arg6: memref<4x1xf32, #tpu.memory_space<vmem>>, %arg7: memref<49x28xf32, #tpu.memory_space<vmem>>, %arg8: memref<49x1xf32, #tpu.memory_space<vmem>>, %arg9: memref<28x14xf32, #tpu.memory_space<vmem>>, %arg10: memref<28x1xf32, #tpu.memory_space<vmem>>, %arg11: memref<28x1xf32, #tpu.memory_space<vmem>>, %arg12: memref<28x1xf32, #tpu.memory_space<vmem>>, %arg13: memref<4x28xf32, #tpu.memory_space<vmem>>, %arg14: memref<4x1xf32, #tpu.memory_space<vmem>>, %arg15: memref<1x4x256xf32, #tpu.memory_space<vmem>>) attributes {dimension_semantics = [#tpu.dimension_semantics<parallel>], iteration_bounds = array<i64: 2>, scalar_prefetch = 0 : i64, scratch_operands = 0 : i64, tpu.core_type = #tpu.core_type<tc>, window_params = [{transform_indices = @transform_0, window_bounds = array<i64: 1, 4, 256>}, {pipeline_mode = #tpu.pipeline_mode<synchronous>, transform_indices = @transform_1, window_bounds = array<i64: 37, 4, 1>}, {pipeline_mode = #tpu.pipeline_mode<synchronous>, transform_indices = @transform_2, window_bounds = array<i64: 20, 20>}, {pipeline_mode = #tpu.pipeline_mode<synchronous>, transform_indices = @transform_3, window_bounds = array<i64: 20, 1>}, {pipeline_mode = #tpu.pipeline_mode<synchronous>, transform_indices = @transform_4, window_bounds = array<i64: 4, 4>}, {pipeline_mode = #tpu.pipeline_mode<synchronous>, transform_indices = @transform_5, window_bounds = array<i64: 4, 1>}, {pipeline_mode = #tpu.pipeline_mode<synchronous>, transform_indices = @transform_6, window_bounds = array<i64: 49, 28>}, {pipeline_mode = #tpu.pipeline_mode<synchronous>, transform_indices = @transform_7, window_bounds = array<i64: 49, 1>}, {pipeline_mode = #tpu.pipeline_mode<synchronous>, transform_indices = @transform_8, window_bounds = array<i64: 28, 14>}, {pipeline_mode = #tpu.pipeline_mode<synchronous>, transform_indices = @transform_9, window_bounds = array<i64: 28, 1>}, {pipeline_mode = #tpu.pipeline_mode<synchronous>, transform_indices = @transform_10, window_bounds = array<i64: 28, 1>}, {pipeline_mode = #tpu.pipeline_mode<synchronous>, transform_indices = @transform_11, window_bounds = array<i64: 28, 1>}, {pipeline_mode = #tpu.pipeline_mode<synchronous>, transform_indices = @transform_12, window_bounds = array<i64: 4, 28>}, {pipeline_mode = #tpu.pipeline_mode<synchronous>, transform_indices = @transform_13, window_bounds = array<i64: 4, 1>}, {transform_indices = @transform_14, window_bounds = array<i64: 1, 4, 256>}]} {
    %c0 = arith.constant 0 : index
    %c0_0 = arith.constant 0 : index
    %c0_1 = arith.constant 0 : index
    %0 = vector.load %arg1[%c0, %c0_0, %c0_1] : memref<1x4x256xf32, #tpu.memory_space<vmem>>, vector<1x4x256xf32>
    %1 = vector.shape_cast %0 : vector<1x4x256xf32> to vector<4x256xf32>
    %2 = tpu.iota {dimensions = array<i32: 1>} : vector<1x256xi32>
    %c16_i32 = arith.constant 16 : i32
    %c0_i32 = arith.constant 0 : i32
    %3 = arith.cmpi eq, %c16_i32, %c0_i32 : i32
    %c1_i32 = arith.constant 1 : i32
    %4 = arith.select %3, %c1_i32, %c16_i32 : i32
    %5 = vector.broadcast %4 : i32 to vector<1x256xi32>
    %6 = arith.remsi %2, %5 : vector<1x256xi32>
    %c0_i32_2 = arith.constant 0 : i32
    %7 = vector.broadcast %c0_i32_2 : i32 to vector<1x256xi32>
    %8 = arith.cmpi ne, %6, %7 : vector<1x256xi32>
    %c0_i32_3 = arith.constant 0 : i32
    %9 = vector.broadcast %c0_i32_3 : i32 to vector<1x256xi32>
    %10 = arith.cmpi slt, %6, %9 : vector<1x256xi32>
    %c0_i32_4 = arith.constant 0 : i32
    %11 = arith.cmpi slt, %4, %c0_i32_4 : i32
    %12 = vector.broadcast %11 : i1 to vector<1x256xi1>
    %13 = vector.broadcast %12 : vector<1x256xi1> to vector<1x256xi1>
    %14 = arith.xori %10, %13 : vector<1x256xi1>
    %15 = arith.andi %14, %8 : vector<1x256xi1>
    %16 = vector.broadcast %4 : i32 to vector<1x256xi32>
    %17 = arith.addi %6, %16 : vector<1x256xi32>
    %18 = arith.select %15, %17, %6 : vector<1x256xi1>, vector<1x256xi32>
    %c0_5 = arith.constant 0 : index
    %c0_6 = arith.constant 0 : index
    %c0_7 = arith.constant 0 : index
    %19 = vector.load %arg2[%c0_5, %c0_6, %c0_7] : memref<37x4x1xf32, #tpu.memory_space<vmem>>, vector<1x4x1xf32>
    %20 = vector.shape_cast %19 : vector<1x4x1xf32> to vector<4x1xf32>
    %21 = vector.broadcast %20 : vector<4x1xf32> to vector<4x256xf32>
    %22 = arith.mulf %21, %1 : vector<4x256xf32>
    %c68_i32 = arith.constant 68 : i32
    %23 = tpu.dynamic_rotate %1 by %c68_i32 dim 1 : vector<4x256xf32>, i32 -> vector<4x256xf32>
    %c64_i32 = arith.constant 64 : i32
    %24 = vector.broadcast %c64_i32 : i32 to vector<1x256xi32>
    %25 = arith.cmpi sge, %2, %24 : vector<1x256xi32>
    %c256_i32 = arith.constant 256 : i32
    %26 = vector.broadcast %c256_i32 : i32 to vector<1x256xi32>
    %27 = arith.cmpi slt, %2, %26 : vector<1x256xi32>
    %28 = arith.andi %25, %27 : vector<1x256xi1>
    %c4_i32 = arith.constant 4 : i32
    %29 = vector.broadcast %c4_i32 : i32 to vector<1x256xi32>
    %30 = arith.cmpi sge, %18, %29 : vector<1x256xi32>
    %31 = arith.andi %28, %30 : vector<1x256xi1>
    %c20_i32 = arith.constant 20 : i32
    %32 = vector.broadcast %c20_i32 : i32 to vector<1x256xi32>
    %33 = arith.cmpi slt, %18, %32 : vector<1x256xi32>
    %34 = arith.andi %31, %33 : vector<1x256xi1>
    %c1 = arith.constant 1 : index
    %c0_8 = arith.constant 0 : index
    %c0_9 = arith.constant 0 : index
    %35 = vector.load %arg2[%c1, %c0_8, %c0_9] : memref<37x4x1xf32, #tpu.memory_space<vmem>>, vector<1x4x1xf32>
    %36 = vector.shape_cast %35 : vector<1x4x1xf32> to vector<4x1xf32>
    %cst = arith.constant 0.000000e+00 : f32
    %37 = vector.shape_cast %34 : vector<1x256xi1> to vector<1x256xi1>
    %38 = vector.broadcast %37 : vector<1x256xi1> to vector<4x256xi1>
    %39 = vector.broadcast %cst : f32 to vector<4x256xf32>
    %40 = arith.select %38, %23, %39 : vector<4x256xi1>, vector<4x256xf32>
    %41 = vector.broadcast %36 : vector<4x1xf32> to vector<4x256xf32>
    %42 = arith.mulf %41, %40 : vector<4x256xf32>
    %c64_i32_10 = arith.constant 64 : i32
    %43 = tpu.dynamic_rotate %1 by %c64_i32_10 dim 1 : vector<4x256xf32>, i32 -> vector<4x256xf32>
    %c64_i32_11 = arith.constant 64 : i32
    %44 = vector.broadcast %c64_i32_11 : i32 to vector<1x256xi32>
    %45 = arith.cmpi sge, %2, %44 : vector<1x256xi32>
    %c256_i32_12 = arith.constant 256 : i32
    %46 = vector.broadcast %c256_i32_12 : i32 to vector<1x256xi32>
    %47 = arith.cmpi slt, %2, %46 : vector<1x256xi32>
    %48 = arith.andi %45, %47 : vector<1x256xi1>
    %c0_i32_13 = arith.constant 0 : i32
    %49 = vector.broadcast %c0_i32_13 : i32 to vector<1x256xi32>
    %50 = arith.cmpi sge, %18, %49 : vector<1x256xi32>
    %51 = arith.andi %48, %50 : vector<1x256xi1>
    %c16_i32_14 = arith.constant 16 : i32
    %52 = vector.broadcast %c16_i32_14 : i32 to vector<1x256xi32>
    %53 = arith.cmpi slt, %18, %52 : vector<1x256xi32>
    %54 = arith.andi %51, %53 : vector<1x256xi1>
    %c2 = arith.constant 2 : index
    %c0_15 = arith.constant 0 : index
    %c0_16 = arith.constant 0 : index
    %55 = vector.load %arg2[%c2, %c0_15, %c0_16] : memref<37x4x1xf32, #tpu.memory_space<vmem>>, vector<1x4x1xf32>
    %56 = vector.shape_cast %55 : vector<1x4x1xf32> to vector<4x1xf32>
    %cst_17 = arith.constant 0.000000e+00 : f32
    %57 = vector.shape_cast %54 : vector<1x256xi1> to vector<1x256xi1>
    %58 = vector.broadcast %57 : vector<1x256xi1> to vector<4x256xi1>
    %59 = vector.broadcast %cst_17 : f32 to vector<4x256xf32>
    %60 = arith.select %58, %43, %59 : vector<4x256xi1>, vector<4x256xf32>
    %61 = vector.broadcast %56 : vector<4x1xf32> to vector<4x256xf32>
    %62 = arith.mulf %61, %60 : vector<4x256xf32>
    %63 = arith.addf %42, %62 : vector<4x256xf32>
    %c60_i32 = arith.constant 60 : i32
    %64 = tpu.dynamic_rotate %1 by %c60_i32 dim 1 : vector<4x256xf32>, i32 -> vector<4x256xf32>
    %c64_i32_18 = arith.constant 64 : i32
    %65 = vector.broadcast %c64_i32_18 : i32 to vector<1x256xi32>
    %66 = arith.cmpi sge, %2, %65 : vector<1x256xi32>
    %c256_i32_19 = arith.constant 256 : i32
    %67 = vector.broadcast %c256_i32_19 : i32 to vector<1x256xi32>
    %68 = arith.cmpi slt, %2, %67 : vector<1x256xi32>
    %69 = arith.andi %66, %68 : vector<1x256xi1>
    %c-4_i32 = arith.constant -4 : i32
    %70 = vector.broadcast %c-4_i32 : i32 to vector<1x256xi32>
    %71 = arith.cmpi sge, %18, %70 : vector<1x256xi32>
    %72 = arith.andi %69, %71 : vector<1x256xi1>
    %c12_i32 = arith.constant 12 : i32
    %73 = vector.broadcast %c12_i32 : i32 to vector<1x256xi32>
    %74 = arith.cmpi slt, %18, %73 : vector<1x256xi32>
    %75 = arith.andi %72, %74 : vector<1x256xi1>
    %c3 = arith.constant 3 : index
    %c0_20 = arith.constant 0 : index
    %c0_21 = arith.constant 0 : index
    %76 = vector.load %arg2[%c3, %c0_20, %c0_21] : memref<37x4x1xf32, #tpu.memory_space<vmem>>, vector<1x4x1xf32>
    %77 = vector.shape_cast %76 : vector<1x4x1xf32> to vector<4x1xf32>
    %cst_22 = arith.constant 0.000000e+00 : f32
    %78 = vector.shape_cast %75 : vector<1x256xi1> to vector<1x256xi1>
    %79 = vector.broadcast %78 : vector<1x256xi1> to vector<4x256xi1>
    %80 = vector.broadcast %cst_22 : f32 to vector<4x256xf32>
    %81 = arith.select %79, %64, %80 : vector<4x256xi1>, vector<4x256xf32>
    %82 = vector.broadcast %77 : vector<4x1xf32> to vector<4x256xf32>
    %83 = arith.mulf %82, %81 : vector<4x256xf32>
    %84 = arith.addf %63, %83 : vector<4x256xf32>
    %c4_i32_23 = arith.constant 4 : i32
    %85 = tpu.dynamic_rotate %1 by %c4_i32_23 dim 1 : vector<4x256xf32>, i32 -> vector<4x256xf32>
    %c0_i32_24 = arith.constant 0 : i32
    %86 = vector.broadcast %c0_i32_24 : i32 to vector<1x256xi32>
    %87 = arith.cmpi sge, %2, %86 : vector<1x256xi32>
    %c256_i32_25 = arith.constant 256 : i32
    %88 = vector.broadcast %c256_i32_25 : i32 to vector<1x256xi32>
    %89 = arith.cmpi slt, %2, %88 : vector<1x256xi32>
    %90 = arith.andi %87, %89 : vector<1x256xi1>
    %c4_i32_26 = arith.constant 4 : i32
    %91 = vector.broadcast %c4_i32_26 : i32 to vector<1x256xi32>
    %92 = arith.cmpi sge, %18, %91 : vector<1x256xi32>
    %93 = arith.andi %90, %92 : vector<1x256xi1>
    %c20_i32_27 = arith.constant 20 : i32
    %94 = vector.broadcast %c20_i32_27 : i32 to vector<1x256xi32>
    %95 = arith.cmpi slt, %18, %94 : vector<1x256xi32>
    %96 = arith.andi %93, %95 : vector<1x256xi1>
    %c4 = arith.constant 4 : index
    %c0_28 = arith.constant 0 : index
    %c0_29 = arith.constant 0 : index
    %97 = vector.load %arg2[%c4, %c0_28, %c0_29] : memref<37x4x1xf32, #tpu.memory_space<vmem>>, vector<1x4x1xf32>
    %98 = vector.shape_cast %97 : vector<1x4x1xf32> to vector<4x1xf32>
    %cst_30 = arith.constant 0.000000e+00 : f32
    %99 = vector.shape_cast %96 : vector<1x256xi1> to vector<1x256xi1>
    %100 = vector.broadcast %99 : vector<1x256xi1> to vector<4x256xi1>
    %101 = vector.broadcast %cst_30 : f32 to vector<4x256xf32>
    %102 = arith.select %100, %85, %101 : vector<4x256xi1>, vector<4x256xf32>
    %103 = vector.broadcast %98 : vector<4x1xf32> to vector<4x256xf32>
    %104 = arith.mulf %103, %102 : vector<4x256xf32>
    %105 = arith.addf %84, %104 : vector<4x256xf32>
    %c5 = arith.constant 5 : index
    %c0_31 = arith.constant 0 : index
    %c0_32 = arith.constant 0 : index
    %106 = vector.load %arg2[%c5, %c0_31, %c0_32] : memref<37x4x1xf32, #tpu.memory_space<vmem>>, vector<1x4x1xf32>
    %107 = vector.shape_cast %106 : vector<1x4x1xf32> to vector<4x1xf32>
    %108 = vector.broadcast %107 : vector<4x1xf32> to vector<4x256xf32>
    %109 = arith.mulf %108, %1 : vector<4x256xf32>
    %110 = arith.addf %105, %109 : vector<4x256xf32>
    %c252_i32 = arith.constant 252 : i32
    %111 = tpu.dynamic_rotate %1 by %c252_i32 dim 1 : vector<4x256xf32>, i32 -> vector<4x256xf32>
    %c0_i32_33 = arith.constant 0 : i32
    %112 = vector.broadcast %c0_i32_33 : i32 to vector<1x256xi32>
    %113 = arith.cmpi sge, %2, %112 : vector<1x256xi32>
    %c256_i32_34 = arith.constant 256 : i32
    %114 = vector.broadcast %c256_i32_34 : i32 to vector<1x256xi32>
    %115 = arith.cmpi slt, %2, %114 : vector<1x256xi32>
    %116 = arith.andi %113, %115 : vector<1x256xi1>
    %c-4_i32_35 = arith.constant -4 : i32
    %117 = vector.broadcast %c-4_i32_35 : i32 to vector<1x256xi32>
    %118 = arith.cmpi sge, %18, %117 : vector<1x256xi32>
    %119 = arith.andi %116, %118 : vector<1x256xi1>
    %c12_i32_36 = arith.constant 12 : i32
    %120 = vector.broadcast %c12_i32_36 : i32 to vector<1x256xi32>
    %121 = arith.cmpi slt, %18, %120 : vector<1x256xi32>
    %122 = arith.andi %119, %121 : vector<1x256xi1>
    %c6 = arith.constant 6 : index
    %c0_37 = arith.constant 0 : index
    %c0_38 = arith.constant 0 : index
    %123 = vector.load %arg2[%c6, %c0_37, %c0_38] : memref<37x4x1xf32, #tpu.memory_space<vmem>>, vector<1x4x1xf32>
    %124 = vector.shape_cast %123 : vector<1x4x1xf32> to vector<4x1xf32>
    %cst_39 = arith.constant 0.000000e+00 : f32
    %125 = vector.shape_cast %122 : vector<1x256xi1> to vector<1x256xi1>
    %126 = vector.broadcast %125 : vector<1x256xi1> to vector<4x256xi1>
    %127 = vector.broadcast %cst_39 : f32 to vector<4x256xf32>
    %128 = arith.select %126, %111, %127 : vector<4x256xi1>, vector<4x256xf32>
    %129 = vector.broadcast %124 : vector<4x1xf32> to vector<4x256xf32>
    %130 = arith.mulf %129, %128 : vector<4x256xf32>
    %131 = arith.addf %110, %130 : vector<4x256xf32>
    %c196_i32 = arith.constant 196 : i32
    %132 = tpu.dynamic_rotate %1 by %c196_i32 dim 1 : vector<4x256xf32>, i32 -> vector<4x256xf32>
    %c0_i32_40 = arith.constant 0 : i32
    %133 = vector.broadcast %c0_i32_40 : i32 to vector<1x256xi32>
    %134 = arith.cmpi sge, %2, %133 : vector<1x256xi32>
    %c192_i32 = arith.constant 192 : i32
    %135 = vector.broadcast %c192_i32 : i32 to vector<1x256xi32>
    %136 = arith.cmpi slt, %2, %135 : vector<1x256xi32>
    %137 = arith.andi %134, %136 : vector<1x256xi1>
    %c4_i32_41 = arith.constant 4 : i32
    %138 = vector.broadcast %c4_i32_41 : i32 to vector<1x256xi32>
    %139 = arith.cmpi sge, %18, %138 : vector<1x256xi32>
    %140 = arith.andi %137, %139 : vector<1x256xi1>
    %c20_i32_42 = arith.constant 20 : i32
    %141 = vector.broadcast %c20_i32_42 : i32 to vector<1x256xi32>
    %142 = arith.cmpi slt, %18, %141 : vector<1x256xi32>
    %143 = arith.andi %140, %142 : vector<1x256xi1>
    %c7 = arith.constant 7 : index
    %c0_43 = arith.constant 0 : index
    %c0_44 = arith.constant 0 : index
    %144 = vector.load %arg2[%c7, %c0_43, %c0_44] : memref<37x4x1xf32, #tpu.memory_space<vmem>>, vector<1x4x1xf32>
    %145 = vector.shape_cast %144 : vector<1x4x1xf32> to vector<4x1xf32>
    %cst_45 = arith.constant 0.000000e+00 : f32
    %146 = vector.shape_cast %143 : vector<1x256xi1> to vector<1x256xi1>
    %147 = vector.broadcast %146 : vector<1x256xi1> to vector<4x256xi1>
    %148 = vector.broadcast %cst_45 : f32 to vector<4x256xf32>
    %149 = arith.select %147, %132, %148 : vector<4x256xi1>, vector<4x256xf32>
    %150 = vector.broadcast %145 : vector<4x1xf32> to vector<4x256xf32>
    %151 = arith.mulf %150, %149 : vector<4x256xf32>
    %152 = arith.addf %131, %151 : vector<4x256xf32>
    %c192_i32_46 = arith.constant 192 : i32
    %153 = tpu.dynamic_rotate %1 by %c192_i32_46 dim 1 : vector<4x256xf32>, i32 -> vector<4x256xf32>
    %c0_i32_47 = arith.constant 0 : i32
    %154 = vector.broadcast %c0_i32_47 : i32 to vector<1x256xi32>
    %155 = arith.cmpi sge, %2, %154 : vector<1x256xi32>
    %c192_i32_48 = arith.constant 192 : i32
    %156 = vector.broadcast %c192_i32_48 : i32 to vector<1x256xi32>
    %157 = arith.cmpi slt, %2, %156 : vector<1x256xi32>
    %158 = arith.andi %155, %157 : vector<1x256xi1>
    %c0_i32_49 = arith.constant 0 : i32
    %159 = vector.broadcast %c0_i32_49 : i32 to vector<1x256xi32>
    %160 = arith.cmpi sge, %18, %159 : vector<1x256xi32>
    %161 = arith.andi %158, %160 : vector<1x256xi1>
    %c16_i32_50 = arith.constant 16 : i32
    %162 = vector.broadcast %c16_i32_50 : i32 to vector<1x256xi32>
    %163 = arith.cmpi slt, %18, %162 : vector<1x256xi32>
    %164 = arith.andi %161, %163 : vector<1x256xi1>
    %c8 = arith.constant 8 : index
    %c0_51 = arith.constant 0 : index
    %c0_52 = arith.constant 0 : index
    %165 = vector.load %arg2[%c8, %c0_51, %c0_52] : memref<37x4x1xf32, #tpu.memory_space<vmem>>, vector<1x4x1xf32>
    %166 = vector.shape_cast %165 : vector<1x4x1xf32> to vector<4x1xf32>
    %cst_53 = arith.constant 0.000000e+00 : f32
    %167 = vector.shape_cast %164 : vector<1x256xi1> to vector<1x256xi1>
    %168 = vector.broadcast %167 : vector<1x256xi1> to vector<4x256xi1>
    %169 = vector.broadcast %cst_53 : f32 to vector<4x256xf32>
    %170 = arith.select %168, %153, %169 : vector<4x256xi1>, vector<4x256xf32>
    %171 = vector.broadcast %166 : vector<4x1xf32> to vector<4x256xf32>
    %172 = arith.mulf %171, %170 : vector<4x256xf32>
    %173 = arith.addf %152, %172 : vector<4x256xf32>
    %c188_i32 = arith.constant 188 : i32
    %174 = tpu.dynamic_rotate %1 by %c188_i32 dim 1 : vector<4x256xf32>, i32 -> vector<4x256xf32>
    %c0_i32_54 = arith.constant 0 : i32
    %175 = vector.broadcast %c0_i32_54 : i32 to vector<1x256xi32>
    %176 = arith.cmpi sge, %2, %175 : vector<1x256xi32>
    %c192_i32_55 = arith.constant 192 : i32
    %177 = vector.broadcast %c192_i32_55 : i32 to vector<1x256xi32>
    %178 = arith.cmpi slt, %2, %177 : vector<1x256xi32>
    %179 = arith.andi %176, %178 : vector<1x256xi1>
    %c-4_i32_56 = arith.constant -4 : i32
    %180 = vector.broadcast %c-4_i32_56 : i32 to vector<1x256xi32>
    %181 = arith.cmpi sge, %18, %180 : vector<1x256xi32>
    %182 = arith.andi %179, %181 : vector<1x256xi1>
    %c12_i32_57 = arith.constant 12 : i32
    %183 = vector.broadcast %c12_i32_57 : i32 to vector<1x256xi32>
    %184 = arith.cmpi slt, %18, %183 : vector<1x256xi32>
    %185 = arith.andi %182, %184 : vector<1x256xi1>
    %c9 = arith.constant 9 : index
    %c0_58 = arith.constant 0 : index
    %c0_59 = arith.constant 0 : index
    %186 = vector.load %arg2[%c9, %c0_58, %c0_59] : memref<37x4x1xf32, #tpu.memory_space<vmem>>, vector<1x4x1xf32>
    %187 = vector.shape_cast %186 : vector<1x4x1xf32> to vector<4x1xf32>
    %cst_60 = arith.constant 0.000000e+00 : f32
    %188 = vector.shape_cast %185 : vector<1x256xi1> to vector<1x256xi1>
    %189 = vector.broadcast %188 : vector<1x256xi1> to vector<4x256xi1>
    %190 = vector.broadcast %cst_60 : f32 to vector<4x256xf32>
    %191 = arith.select %189, %174, %190 : vector<4x256xi1>, vector<4x256xf32>
    %192 = vector.broadcast %187 : vector<4x1xf32> to vector<4x256xf32>
    %193 = arith.mulf %192, %191 : vector<4x256xf32>
    %194 = arith.addf %173, %193 : vector<4x256xf32>
    %c136_i32 = arith.constant 136 : i32
    %195 = tpu.dynamic_rotate %1 by %c136_i32 dim 1 : vector<4x256xf32>, i32 -> vector<4x256xf32>
    %c128_i32 = arith.constant 128 : i32
    %196 = vector.broadcast %c128_i32 : i32 to vector<1x256xi32>
    %197 = arith.cmpi sge, %2, %196 : vector<1x256xi32>
    %c256_i32_61 = arith.constant 256 : i32
    %198 = vector.broadcast %c256_i32_61 : i32 to vector<1x256xi32>
    %199 = arith.cmpi slt, %2, %198 : vector<1x256xi32>
    %200 = arith.andi %197, %199 : vector<1x256xi1>
    %c8_i32 = arith.constant 8 : i32
    %201 = vector.broadcast %c8_i32 : i32 to vector<1x256xi32>
    %202 = arith.cmpi sge, %18, %201 : vector<1x256xi32>
    %203 = arith.andi %200, %202 : vector<1x256xi1>
    %c24_i32 = arith.constant 24 : i32
    %204 = vector.broadcast %c24_i32 : i32 to vector<1x256xi32>
    %205 = arith.cmpi slt, %18, %204 : vector<1x256xi32>
    %206 = arith.andi %203, %205 : vector<1x256xi1>
    %c10 = arith.constant 10 : index
    %c0_62 = arith.constant 0 : index
    %c0_63 = arith.constant 0 : index
    %207 = vector.load %arg2[%c10, %c0_62, %c0_63] : memref<37x4x1xf32, #tpu.memory_space<vmem>>, vector<1x4x1xf32>
    %208 = vector.shape_cast %207 : vector<1x4x1xf32> to vector<4x1xf32>
    %cst_64 = arith.constant 0.000000e+00 : f32
    %209 = vector.shape_cast %206 : vector<1x256xi1> to vector<1x256xi1>
    %210 = vector.broadcast %209 : vector<1x256xi1> to vector<4x256xi1>
    %211 = vector.broadcast %cst_64 : f32 to vector<4x256xf32>
    %212 = arith.select %210, %195, %211 : vector<4x256xi1>, vector<4x256xf32>
    %213 = vector.broadcast %208 : vector<4x1xf32> to vector<4x256xf32>
    %214 = arith.mulf %213, %212 : vector<4x256xf32>
    %c128_i32_65 = arith.constant 128 : i32
    %215 = tpu.dynamic_rotate %1 by %c128_i32_65 dim 1 : vector<4x256xf32>, i32 -> vector<4x256xf32>
    %c128_i32_66 = arith.constant 128 : i32
    %216 = vector.broadcast %c128_i32_66 : i32 to vector<1x256xi32>
    %217 = arith.cmpi sge, %2, %216 : vector<1x256xi32>
    %c256_i32_67 = arith.constant 256 : i32
    %218 = vector.broadcast %c256_i32_67 : i32 to vector<1x256xi32>
    %219 = arith.cmpi slt, %2, %218 : vector<1x256xi32>
    %220 = arith.andi %217, %219 : vector<1x256xi1>
    %c0_i32_68 = arith.constant 0 : i32
    %221 = vector.broadcast %c0_i32_68 : i32 to vector<1x256xi32>
    %222 = arith.cmpi sge, %18, %221 : vector<1x256xi32>
    %223 = arith.andi %220, %222 : vector<1x256xi1>
    %c16_i32_69 = arith.constant 16 : i32
    %224 = vector.broadcast %c16_i32_69 : i32 to vector<1x256xi32>
    %225 = arith.cmpi slt, %18, %224 : vector<1x256xi32>
    %226 = arith.andi %223, %225 : vector<1x256xi1>
    %c11 = arith.constant 11 : index
    %c0_70 = arith.constant 0 : index
    %c0_71 = arith.constant 0 : index
    %227 = vector.load %arg2[%c11, %c0_70, %c0_71] : memref<37x4x1xf32, #tpu.memory_space<vmem>>, vector<1x4x1xf32>
    %228 = vector.shape_cast %227 : vector<1x4x1xf32> to vector<4x1xf32>
    %cst_72 = arith.constant 0.000000e+00 : f32
    %229 = vector.shape_cast %226 : vector<1x256xi1> to vector<1x256xi1>
    %230 = vector.broadcast %229 : vector<1x256xi1> to vector<4x256xi1>
    %231 = vector.broadcast %cst_72 : f32 to vector<4x256xf32>
    %232 = arith.select %230, %215, %231 : vector<4x256xi1>, vector<4x256xf32>
    %233 = vector.broadcast %228 : vector<4x1xf32> to vector<4x256xf32>
    %234 = arith.mulf %233, %232 : vector<4x256xf32>
    %235 = arith.addf %214, %234 : vector<4x256xf32>
    %c120_i32 = arith.constant 120 : i32
    %236 = tpu.dynamic_rotate %1 by %c120_i32 dim 1 : vector<4x256xf32>, i32 -> vector<4x256xf32>
    %c128_i32_73 = arith.constant 128 : i32
    %237 = vector.broadcast %c128_i32_73 : i32 to vector<1x256xi32>
    %238 = arith.cmpi sge, %2, %237 : vector<1x256xi32>
    %c256_i32_74 = arith.constant 256 : i32
    %239 = vector.broadcast %c256_i32_74 : i32 to vector<1x256xi32>
    %240 = arith.cmpi slt, %2, %239 : vector<1x256xi32>
    %241 = arith.andi %238, %240 : vector<1x256xi1>
    %c-8_i32 = arith.constant -8 : i32
    %242 = vector.broadcast %c-8_i32 : i32 to vector<1x256xi32>
    %243 = arith.cmpi sge, %18, %242 : vector<1x256xi32>
    %244 = arith.andi %241, %243 : vector<1x256xi1>
    %c8_i32_75 = arith.constant 8 : i32
    %245 = vector.broadcast %c8_i32_75 : i32 to vector<1x256xi32>
    %246 = arith.cmpi slt, %18, %245 : vector<1x256xi32>
    %247 = arith.andi %244, %246 : vector<1x256xi1>
    %c12 = arith.constant 12 : index
    %c0_76 = arith.constant 0 : index
    %c0_77 = arith.constant 0 : index
    %248 = vector.load %arg2[%c12, %c0_76, %c0_77] : memref<37x4x1xf32, #tpu.memory_space<vmem>>, vector<1x4x1xf32>
    %249 = vector.shape_cast %248 : vector<1x4x1xf32> to vector<4x1xf32>
    %cst_78 = arith.constant 0.000000e+00 : f32
    %250 = vector.shape_cast %247 : vector<1x256xi1> to vector<1x256xi1>
    %251 = vector.broadcast %250 : vector<1x256xi1> to vector<4x256xi1>
    %252 = vector.broadcast %cst_78 : f32 to vector<4x256xf32>
    %253 = arith.select %251, %236, %252 : vector<4x256xi1>, vector<4x256xf32>
    %254 = vector.broadcast %249 : vector<4x1xf32> to vector<4x256xf32>
    %255 = arith.mulf %254, %253 : vector<4x256xf32>
    %256 = arith.addf %235, %255 : vector<4x256xf32>
    %c8_i32_79 = arith.constant 8 : i32
    %257 = tpu.dynamic_rotate %1 by %c8_i32_79 dim 1 : vector<4x256xf32>, i32 -> vector<4x256xf32>
    %c0_i32_80 = arith.constant 0 : i32
    %258 = vector.broadcast %c0_i32_80 : i32 to vector<1x256xi32>
    %259 = arith.cmpi sge, %2, %258 : vector<1x256xi32>
    %c256_i32_81 = arith.constant 256 : i32
    %260 = vector.broadcast %c256_i32_81 : i32 to vector<1x256xi32>
    %261 = arith.cmpi slt, %2, %260 : vector<1x256xi32>
    %262 = arith.andi %259, %261 : vector<1x256xi1>
    %c8_i32_82 = arith.constant 8 : i32
    %263 = vector.broadcast %c8_i32_82 : i32 to vector<1x256xi32>
    %264 = arith.cmpi sge, %18, %263 : vector<1x256xi32>
    %265 = arith.andi %262, %264 : vector<1x256xi1>
    %c24_i32_83 = arith.constant 24 : i32
    %266 = vector.broadcast %c24_i32_83 : i32 to vector<1x256xi32>
    %267 = arith.cmpi slt, %18, %266 : vector<1x256xi32>
    %268 = arith.andi %265, %267 : vector<1x256xi1>
    %c13 = arith.constant 13 : index
    %c0_84 = arith.constant 0 : index
    %c0_85 = arith.constant 0 : index
    %269 = vector.load %arg2[%c13, %c0_84, %c0_85] : memref<37x4x1xf32, #tpu.memory_space<vmem>>, vector<1x4x1xf32>
    %270 = vector.shape_cast %269 : vector<1x4x1xf32> to vector<4x1xf32>
    %cst_86 = arith.constant 0.000000e+00 : f32
    %271 = vector.shape_cast %268 : vector<1x256xi1> to vector<1x256xi1>
    %272 = vector.broadcast %271 : vector<1x256xi1> to vector<4x256xi1>
    %273 = vector.broadcast %cst_86 : f32 to vector<4x256xf32>
    %274 = arith.select %272, %257, %273 : vector<4x256xi1>, vector<4x256xf32>
    %275 = vector.broadcast %270 : vector<4x1xf32> to vector<4x256xf32>
    %276 = arith.mulf %275, %274 : vector<4x256xf32>
    %277 = arith.addf %256, %276 : vector<4x256xf32>
    %c14 = arith.constant 14 : index
    %c0_87 = arith.constant 0 : index
    %c0_88 = arith.constant 0 : index
    %278 = vector.load %arg2[%c14, %c0_87, %c0_88] : memref<37x4x1xf32, #tpu.memory_space<vmem>>, vector<1x4x1xf32>
    %279 = vector.shape_cast %278 : vector<1x4x1xf32> to vector<4x1xf32>
    %280 = vector.broadcast %279 : vector<4x1xf32> to vector<4x256xf32>
    %281 = arith.mulf %280, %1 : vector<4x256xf32>
    %282 = arith.addf %277, %281 : vector<4x256xf32>
    %c248_i32 = arith.constant 248 : i32
    %283 = tpu.dynamic_rotate %1 by %c248_i32 dim 1 : vector<4x256xf32>, i32 -> vector<4x256xf32>
    %c0_i32_89 = arith.constant 0 : i32
    %284 = vector.broadcast %c0_i32_89 : i32 to vector<1x256xi32>
    %285 = arith.cmpi sge, %2, %284 : vector<1x256xi32>
    %c256_i32_90 = arith.constant 256 : i32
    %286 = vector.broadcast %c256_i32_90 : i32 to vector<1x256xi32>
    %287 = arith.cmpi slt, %2, %286 : vector<1x256xi32>
    %288 = arith.andi %285, %287 : vector<1x256xi1>
    %c-8_i32_91 = arith.constant -8 : i32
    %289 = vector.broadcast %c-8_i32_91 : i32 to vector<1x256xi32>
    %290 = arith.cmpi sge, %18, %289 : vector<1x256xi32>
    %291 = arith.andi %288, %290 : vector<1x256xi1>
    %c8_i32_92 = arith.constant 8 : i32
    %292 = vector.broadcast %c8_i32_92 : i32 to vector<1x256xi32>
    %293 = arith.cmpi slt, %18, %292 : vector<1x256xi32>
    %294 = arith.andi %291, %293 : vector<1x256xi1>
    %c15 = arith.constant 15 : index
    %c0_93 = arith.constant 0 : index
    %c0_94 = arith.constant 0 : index
    %295 = vector.load %arg2[%c15, %c0_93, %c0_94] : memref<37x4x1xf32, #tpu.memory_space<vmem>>, vector<1x4x1xf32>
    %296 = vector.shape_cast %295 : vector<1x4x1xf32> to vector<4x1xf32>
    %cst_95 = arith.constant 0.000000e+00 : f32
    %297 = vector.shape_cast %294 : vector<1x256xi1> to vector<1x256xi1>
    %298 = vector.broadcast %297 : vector<1x256xi1> to vector<4x256xi1>
    %299 = vector.broadcast %cst_95 : f32 to vector<4x256xf32>
    %300 = arith.select %298, %283, %299 : vector<4x256xi1>, vector<4x256xf32>
    %301 = vector.broadcast %296 : vector<4x1xf32> to vector<4x256xf32>
    %302 = arith.mulf %301, %300 : vector<4x256xf32>
    %303 = arith.addf %282, %302 : vector<4x256xf32>
    %c136_i32_96 = arith.constant 136 : i32
    %304 = tpu.dynamic_rotate %1 by %c136_i32_96 dim 1 : vector<4x256xf32>, i32 -> vector<4x256xf32>
    %c0_i32_97 = arith.constant 0 : i32
    %305 = vector.broadcast %c0_i32_97 : i32 to vector<1x256xi32>
    %306 = arith.cmpi sge, %2, %305 : vector<1x256xi32>
    %c128_i32_98 = arith.constant 128 : i32
    %307 = vector.broadcast %c128_i32_98 : i32 to vector<1x256xi32>
    %308 = arith.cmpi slt, %2, %307 : vector<1x256xi32>
    %309 = arith.andi %306, %308 : vector<1x256xi1>
    %c8_i32_99 = arith.constant 8 : i32
    %310 = vector.broadcast %c8_i32_99 : i32 to vector<1x256xi32>
    %311 = arith.cmpi sge, %18, %310 : vector<1x256xi32>
    %312 = arith.andi %309, %311 : vector<1x256xi1>
    %c24_i32_100 = arith.constant 24 : i32
    %313 = vector.broadcast %c24_i32_100 : i32 to vector<1x256xi32>
    %314 = arith.cmpi slt, %18, %313 : vector<1x256xi32>
    %315 = arith.andi %312, %314 : vector<1x256xi1>
    %c16 = arith.constant 16 : index
    %c0_101 = arith.constant 0 : index
    %c0_102 = arith.constant 0 : index
    %316 = vector.load %arg2[%c16, %c0_101, %c0_102] : memref<37x4x1xf32, #tpu.memory_space<vmem>>, vector<1x4x1xf32>
    %317 = vector.shape_cast %316 : vector<1x4x1xf32> to vector<4x1xf32>
    %cst_103 = arith.constant 0.000000e+00 : f32
    %318 = vector.shape_cast %315 : vector<1x256xi1> to vector<1x256xi1>
    %319 = vector.broadcast %318 : vector<1x256xi1> to vector<4x256xi1>
    %320 = vector.broadcast %cst_103 : f32 to vector<4x256xf32>
    %321 = arith.select %319, %304, %320 : vector<4x256xi1>, vector<4x256xf32>
    %322 = vector.broadcast %317 : vector<4x1xf32> to vector<4x256xf32>
    %323 = arith.mulf %322, %321 : vector<4x256xf32>
    %324 = arith.addf %303, %323 : vector<4x256xf32>
    %c128_i32_104 = arith.constant 128 : i32
    %325 = tpu.dynamic_rotate %1 by %c128_i32_104 dim 1 : vector<4x256xf32>, i32 -> vector<4x256xf32>
    %c0_i32_105 = arith.constant 0 : i32
    %326 = vector.broadcast %c0_i32_105 : i32 to vector<1x256xi32>
    %327 = arith.cmpi sge, %2, %326 : vector<1x256xi32>
    %c128_i32_106 = arith.constant 128 : i32
    %328 = vector.broadcast %c128_i32_106 : i32 to vector<1x256xi32>
    %329 = arith.cmpi slt, %2, %328 : vector<1x256xi32>
    %330 = arith.andi %327, %329 : vector<1x256xi1>
    %c0_i32_107 = arith.constant 0 : i32
    %331 = vector.broadcast %c0_i32_107 : i32 to vector<1x256xi32>
    %332 = arith.cmpi sge, %18, %331 : vector<1x256xi32>
    %333 = arith.andi %330, %332 : vector<1x256xi1>
    %c16_i32_108 = arith.constant 16 : i32
    %334 = vector.broadcast %c16_i32_108 : i32 to vector<1x256xi32>
    %335 = arith.cmpi slt, %18, %334 : vector<1x256xi32>
    %336 = arith.andi %333, %335 : vector<1x256xi1>
    %c17 = arith.constant 17 : index
    %c0_109 = arith.constant 0 : index
    %c0_110 = arith.constant 0 : index
    %337 = vector.load %arg2[%c17, %c0_109, %c0_110] : memref<37x4x1xf32, #tpu.memory_space<vmem>>, vector<1x4x1xf32>
    %338 = vector.shape_cast %337 : vector<1x4x1xf32> to vector<4x1xf32>
    %cst_111 = arith.constant 0.000000e+00 : f32
    %339 = vector.shape_cast %336 : vector<1x256xi1> to vector<1x256xi1>
    %340 = vector.broadcast %339 : vector<1x256xi1> to vector<4x256xi1>
    %341 = vector.broadcast %cst_111 : f32 to vector<4x256xf32>
    %342 = arith.select %340, %325, %341 : vector<4x256xi1>, vector<4x256xf32>
    %343 = vector.broadcast %338 : vector<4x1xf32> to vector<4x256xf32>
    %344 = arith.mulf %343, %342 : vector<4x256xf32>
    %345 = arith.addf %324, %344 : vector<4x256xf32>
    %c120_i32_112 = arith.constant 120 : i32
    %346 = tpu.dynamic_rotate %1 by %c120_i32_112 dim 1 : vector<4x256xf32>, i32 -> vector<4x256xf32>
    %c0_i32_113 = arith.constant 0 : i32
    %347 = vector.broadcast %c0_i32_113 : i32 to vector<1x256xi32>
    %348 = arith.cmpi sge, %2, %347 : vector<1x256xi32>
    %c128_i32_114 = arith.constant 128 : i32
    %349 = vector.broadcast %c128_i32_114 : i32 to vector<1x256xi32>
    %350 = arith.cmpi slt, %2, %349 : vector<1x256xi32>
    %351 = arith.andi %348, %350 : vector<1x256xi1>
    %c-8_i32_115 = arith.constant -8 : i32
    %352 = vector.broadcast %c-8_i32_115 : i32 to vector<1x256xi32>
    %353 = arith.cmpi sge, %18, %352 : vector<1x256xi32>
    %354 = arith.andi %351, %353 : vector<1x256xi1>
    %c8_i32_116 = arith.constant 8 : i32
    %355 = vector.broadcast %c8_i32_116 : i32 to vector<1x256xi32>
    %356 = arith.cmpi slt, %18, %355 : vector<1x256xi32>
    %357 = arith.andi %354, %356 : vector<1x256xi1>
    %c18 = arith.constant 18 : index
    %c0_117 = arith.constant 0 : index
    %c0_118 = arith.constant 0 : index
    %358 = vector.load %arg2[%c18, %c0_117, %c0_118] : memref<37x4x1xf32, #tpu.memory_space<vmem>>, vector<1x4x1xf32>
    %359 = vector.shape_cast %358 : vector<1x4x1xf32> to vector<4x1xf32>
    %cst_119 = arith.constant 0.000000e+00 : f32
    %360 = vector.shape_cast %357 : vector<1x256xi1> to vector<1x256xi1>
    %361 = vector.broadcast %360 : vector<1x256xi1> to vector<4x256xi1>
    %362 = vector.broadcast %cst_119 : f32 to vector<4x256xf32>
    %363 = arith.select %361, %346, %362 : vector<4x256xi1>, vector<4x256xf32>
    %364 = vector.broadcast %359 : vector<4x1xf32> to vector<4x256xf32>
    %365 = arith.mulf %364, %363 : vector<4x256xf32>
    %366 = arith.addf %345, %365 : vector<4x256xf32>
    %c204_i32 = arith.constant 204 : i32
    %367 = tpu.dynamic_rotate %1 by %c204_i32 dim 1 : vector<4x256xf32>, i32 -> vector<4x256xf32>
    %c192_i32_120 = arith.constant 192 : i32
    %368 = vector.broadcast %c192_i32_120 : i32 to vector<1x256xi32>
    %369 = arith.cmpi sge, %2, %368 : vector<1x256xi32>
    %c256_i32_121 = arith.constant 256 : i32
    %370 = vector.broadcast %c256_i32_121 : i32 to vector<1x256xi32>
    %371 = arith.cmpi slt, %2, %370 : vector<1x256xi32>
    %372 = arith.andi %369, %371 : vector<1x256xi1>
    %c12_i32_122 = arith.constant 12 : i32
    %373 = vector.broadcast %c12_i32_122 : i32 to vector<1x256xi32>
    %374 = arith.cmpi sge, %18, %373 : vector<1x256xi32>
    %375 = arith.andi %372, %374 : vector<1x256xi1>
    %c28_i32 = arith.constant 28 : i32
    %376 = vector.broadcast %c28_i32 : i32 to vector<1x256xi32>
    %377 = arith.cmpi slt, %18, %376 : vector<1x256xi32>
    %378 = arith.andi %375, %377 : vector<1x256xi1>
    %c19 = arith.constant 19 : index
    %c0_123 = arith.constant 0 : index
    %c0_124 = arith.constant 0 : index
    %379 = vector.load %arg2[%c19, %c0_123, %c0_124] : memref<37x4x1xf32, #tpu.memory_space<vmem>>, vector<1x4x1xf32>
    %380 = vector.shape_cast %379 : vector<1x4x1xf32> to vector<4x1xf32>
    %cst_125 = arith.constant 0.000000e+00 : f32
    %381 = vector.shape_cast %378 : vector<1x256xi1> to vector<1x256xi1>
    %382 = vector.broadcast %381 : vector<1x256xi1> to vector<4x256xi1>
    %383 = vector.broadcast %cst_125 : f32 to vector<4x256xf32>
    %384 = arith.select %382, %367, %383 : vector<4x256xi1>, vector<4x256xf32>
    %385 = vector.broadcast %380 : vector<4x1xf32> to vector<4x256xf32>
    %386 = arith.mulf %385, %384 : vector<4x256xf32>
    %c192_i32_126 = arith.constant 192 : i32
    %387 = tpu.dynamic_rotate %1 by %c192_i32_126 dim 1 : vector<4x256xf32>, i32 -> vector<4x256xf32>
    %c192_i32_127 = arith.constant 192 : i32
    %388 = vector.broadcast %c192_i32_127 : i32 to vector<1x256xi32>
    %389 = arith.cmpi sge, %2, %388 : vector<1x256xi32>
    %c256_i32_128 = arith.constant 256 : i32
    %390 = vector.broadcast %c256_i32_128 : i32 to vector<1x256xi32>
    %391 = arith.cmpi slt, %2, %390 : vector<1x256xi32>
    %392 = arith.andi %389, %391 : vector<1x256xi1>
    %c0_i32_129 = arith.constant 0 : i32
    %393 = vector.broadcast %c0_i32_129 : i32 to vector<1x256xi32>
    %394 = arith.cmpi sge, %18, %393 : vector<1x256xi32>
    %395 = arith.andi %392, %394 : vector<1x256xi1>
    %c16_i32_130 = arith.constant 16 : i32
    %396 = vector.broadcast %c16_i32_130 : i32 to vector<1x256xi32>
    %397 = arith.cmpi slt, %18, %396 : vector<1x256xi32>
    %398 = arith.andi %395, %397 : vector<1x256xi1>
    %c20 = arith.constant 20 : index
    %c0_131 = arith.constant 0 : index
    %c0_132 = arith.constant 0 : index
    %399 = vector.load %arg2[%c20, %c0_131, %c0_132] : memref<37x4x1xf32, #tpu.memory_space<vmem>>, vector<1x4x1xf32>
    %400 = vector.shape_cast %399 : vector<1x4x1xf32> to vector<4x1xf32>
    %cst_133 = arith.constant 0.000000e+00 : f32
    %401 = vector.shape_cast %398 : vector<1x256xi1> to vector<1x256xi1>
    %402 = vector.broadcast %401 : vector<1x256xi1> to vector<4x256xi1>
    %403 = vector.broadcast %cst_133 : f32 to vector<4x256xf32>
    %404 = arith.select %402, %387, %403 : vector<4x256xi1>, vector<4x256xf32>
    %405 = vector.broadcast %400 : vector<4x1xf32> to vector<4x256xf32>
    %406 = arith.mulf %405, %404 : vector<4x256xf32>
    %407 = arith.addf %386, %406 : vector<4x256xf32>
    %c180_i32 = arith.constant 180 : i32
    %408 = tpu.dynamic_rotate %1 by %c180_i32 dim 1 : vector<4x256xf32>, i32 -> vector<4x256xf32>
    %c192_i32_134 = arith.constant 192 : i32
    %409 = vector.broadcast %c192_i32_134 : i32 to vector<1x256xi32>
    %410 = arith.cmpi sge, %2, %409 : vector<1x256xi32>
    %c256_i32_135 = arith.constant 256 : i32
    %411 = vector.broadcast %c256_i32_135 : i32 to vector<1x256xi32>
    %412 = arith.cmpi slt, %2, %411 : vector<1x256xi32>
    %413 = arith.andi %410, %412 : vector<1x256xi1>
    %c-12_i32 = arith.constant -12 : i32
    %414 = vector.broadcast %c-12_i32 : i32 to vector<1x256xi32>
    %415 = arith.cmpi sge, %18, %414 : vector<1x256xi32>
    %416 = arith.andi %413, %415 : vector<1x256xi1>
    %c4_i32_136 = arith.constant 4 : i32
    %417 = vector.broadcast %c4_i32_136 : i32 to vector<1x256xi32>
    %418 = arith.cmpi slt, %18, %417 : vector<1x256xi32>
    %419 = arith.andi %416, %418 : vector<1x256xi1>
    %c21 = arith.constant 21 : index
    %c0_137 = arith.constant 0 : index
    %c0_138 = arith.constant 0 : index
    %420 = vector.load %arg2[%c21, %c0_137, %c0_138] : memref<37x4x1xf32, #tpu.memory_space<vmem>>, vector<1x4x1xf32>
    %421 = vector.shape_cast %420 : vector<1x4x1xf32> to vector<4x1xf32>
    %cst_139 = arith.constant 0.000000e+00 : f32
    %422 = vector.shape_cast %419 : vector<1x256xi1> to vector<1x256xi1>
    %423 = vector.broadcast %422 : vector<1x256xi1> to vector<4x256xi1>
    %424 = vector.broadcast %cst_139 : f32 to vector<4x256xf32>
    %425 = arith.select %423, %408, %424 : vector<4x256xi1>, vector<4x256xf32>
    %426 = vector.broadcast %421 : vector<4x1xf32> to vector<4x256xf32>
    %427 = arith.mulf %426, %425 : vector<4x256xf32>
    %428 = arith.addf %407, %427 : vector<4x256xf32>
    %c12_i32_140 = arith.constant 12 : i32
    %429 = tpu.dynamic_rotate %1 by %c12_i32_140 dim 1 : vector<4x256xf32>, i32 -> vector<4x256xf32>
    %c0_i32_141 = arith.constant 0 : i32
    %430 = vector.broadcast %c0_i32_141 : i32 to vector<1x256xi32>
    %431 = arith.cmpi sge, %2, %430 : vector<1x256xi32>
    %c256_i32_142 = arith.constant 256 : i32
    %432 = vector.broadcast %c256_i32_142 : i32 to vector<1x256xi32>
    %433 = arith.cmpi slt, %2, %432 : vector<1x256xi32>
    %434 = arith.andi %431, %433 : vector<1x256xi1>
    %c12_i32_143 = arith.constant 12 : i32
    %435 = vector.broadcast %c12_i32_143 : i32 to vector<1x256xi32>
    %436 = arith.cmpi sge, %18, %435 : vector<1x256xi32>
    %437 = arith.andi %434, %436 : vector<1x256xi1>
    %c28_i32_144 = arith.constant 28 : i32
    %438 = vector.broadcast %c28_i32_144 : i32 to vector<1x256xi32>
    %439 = arith.cmpi slt, %18, %438 : vector<1x256xi32>
    %440 = arith.andi %437, %439 : vector<1x256xi1>
    %c22 = arith.constant 22 : index
    %c0_145 = arith.constant 0 : index
    %c0_146 = arith.constant 0 : index
    %441 = vector.load %arg2[%c22, %c0_145, %c0_146] : memref<37x4x1xf32, #tpu.memory_space<vmem>>, vector<1x4x1xf32>
    %442 = vector.shape_cast %441 : vector<1x4x1xf32> to vector<4x1xf32>
    %cst_147 = arith.constant 0.000000e+00 : f32
    %443 = vector.shape_cast %440 : vector<1x256xi1> to vector<1x256xi1>
    %444 = vector.broadcast %443 : vector<1x256xi1> to vector<4x256xi1>
    %445 = vector.broadcast %cst_147 : f32 to vector<4x256xf32>
    %446 = arith.select %444, %429, %445 : vector<4x256xi1>, vector<4x256xf32>
    %447 = vector.broadcast %442 : vector<4x1xf32> to vector<4x256xf32>
    %448 = arith.mulf %447, %446 : vector<4x256xf32>
    %449 = arith.addf %428, %448 : vector<4x256xf32>
    %c23 = arith.constant 23 : index
    %c0_148 = arith.constant 0 : index
    %c0_149 = arith.constant 0 : index
    %450 = vector.load %arg2[%c23, %c0_148, %c0_149] : memref<37x4x1xf32, #tpu.memory_space<vmem>>, vector<1x4x1xf32>
    %451 = vector.shape_cast %450 : vector<1x4x1xf32> to vector<4x1xf32>
    %452 = vector.broadcast %451 : vector<4x1xf32> to vector<4x256xf32>
    %453 = arith.mulf %452, %1 : vector<4x256xf32>
    %454 = arith.addf %449, %453 : vector<4x256xf32>
    %c244_i32 = arith.constant 244 : i32
    %455 = tpu.dynamic_rotate %1 by %c244_i32 dim 1 : vector<4x256xf32>, i32 -> vector<4x256xf32>
    %c0_i32_150 = arith.constant 0 : i32
    %456 = vector.broadcast %c0_i32_150 : i32 to vector<1x256xi32>
    %457 = arith.cmpi sge, %2, %456 : vector<1x256xi32>
    %c256_i32_151 = arith.constant 256 : i32
    %458 = vector.broadcast %c256_i32_151 : i32 to vector<1x256xi32>
    %459 = arith.cmpi slt, %2, %458 : vector<1x256xi32>
    %460 = arith.andi %457, %459 : vector<1x256xi1>
    %c-12_i32_152 = arith.constant -12 : i32
    %461 = vector.broadcast %c-12_i32_152 : i32 to vector<1x256xi32>
    %462 = arith.cmpi sge, %18, %461 : vector<1x256xi32>
    %463 = arith.andi %460, %462 : vector<1x256xi1>
    %c4_i32_153 = arith.constant 4 : i32
    %464 = vector.broadcast %c4_i32_153 : i32 to vector<1x256xi32>
    %465 = arith.cmpi slt, %18, %464 : vector<1x256xi32>
    %466 = arith.andi %463, %465 : vector<1x256xi1>
    %c24 = arith.constant 24 : index
    %c0_154 = arith.constant 0 : index
    %c0_155 = arith.constant 0 : index
    %467 = vector.load %arg2[%c24, %c0_154, %c0_155] : memref<37x4x1xf32, #tpu.memory_space<vmem>>, vector<1x4x1xf32>
    %468 = vector.shape_cast %467 : vector<1x4x1xf32> to vector<4x1xf32>
    %cst_156 = arith.constant 0.000000e+00 : f32
    %469 = vector.shape_cast %466 : vector<1x256xi1> to vector<1x256xi1>
    %470 = vector.broadcast %469 : vector<1x256xi1> to vector<4x256xi1>
    %471 = vector.broadcast %cst_156 : f32 to vector<4x256xf32>
    %472 = arith.select %470, %455, %471 : vector<4x256xi1>, vector<4x256xf32>
    %473 = vector.broadcast %468 : vector<4x1xf32> to vector<4x256xf32>
    %474 = arith.mulf %473, %472 : vector<4x256xf32>
    %475 = arith.addf %454, %474 : vector<4x256xf32>
    %c76_i32 = arith.constant 76 : i32
    %476 = tpu.dynamic_rotate %1 by %c76_i32 dim 1 : vector<4x256xf32>, i32 -> vector<4x256xf32>
    %c0_i32_157 = arith.constant 0 : i32
    %477 = vector.broadcast %c0_i32_157 : i32 to vector<1x256xi32>
    %478 = arith.cmpi sge, %2, %477 : vector<1x256xi32>
    %c64_i32_158 = arith.constant 64 : i32
    %479 = vector.broadcast %c64_i32_158 : i32 to vector<1x256xi32>
    %480 = arith.cmpi slt, %2, %479 : vector<1x256xi32>
    %481 = arith.andi %478, %480 : vector<1x256xi1>
    %c12_i32_159 = arith.constant 12 : i32
    %482 = vector.broadcast %c12_i32_159 : i32 to vector<1x256xi32>
    %483 = arith.cmpi sge, %18, %482 : vector<1x256xi32>
    %484 = arith.andi %481, %483 : vector<1x256xi1>
    %c28_i32_160 = arith.constant 28 : i32
    %485 = vector.broadcast %c28_i32_160 : i32 to vector<1x256xi32>
    %486 = arith.cmpi slt, %18, %485 : vector<1x256xi32>
    %487 = arith.andi %484, %486 : vector<1x256xi1>
    %c25 = arith.constant 25 : index
    %c0_161 = arith.constant 0 : index
    %c0_162 = arith.constant 0 : index
    %488 = vector.load %arg2[%c25, %c0_161, %c0_162] : memref<37x4x1xf32, #tpu.memory_space<vmem>>, vector<1x4x1xf32>
    %489 = vector.shape_cast %488 : vector<1x4x1xf32> to vector<4x1xf32>
    %cst_163 = arith.constant 0.000000e+00 : f32
    %490 = vector.shape_cast %487 : vector<1x256xi1> to vector<1x256xi1>
    %491 = vector.broadcast %490 : vector<1x256xi1> to vector<4x256xi1>
    %492 = vector.broadcast %cst_163 : f32 to vector<4x256xf32>
    %493 = arith.select %491, %476, %492 : vector<4x256xi1>, vector<4x256xf32>
    %494 = vector.broadcast %489 : vector<4x1xf32> to vector<4x256xf32>
    %495 = arith.mulf %494, %493 : vector<4x256xf32>
    %496 = arith.addf %475, %495 : vector<4x256xf32>
    %c64_i32_164 = arith.constant 64 : i32
    %497 = tpu.dynamic_rotate %1 by %c64_i32_164 dim 1 : vector<4x256xf32>, i32 -> vector<4x256xf32>
    %c0_i32_165 = arith.constant 0 : i32
    %498 = vector.broadcast %c0_i32_165 : i32 to vector<1x256xi32>
    %499 = arith.cmpi sge, %2, %498 : vector<1x256xi32>
    %c64_i32_166 = arith.constant 64 : i32
    %500 = vector.broadcast %c64_i32_166 : i32 to vector<1x256xi32>
    %501 = arith.cmpi slt, %2, %500 : vector<1x256xi32>
    %502 = arith.andi %499, %501 : vector<1x256xi1>
    %c0_i32_167 = arith.constant 0 : i32
    %503 = vector.broadcast %c0_i32_167 : i32 to vector<1x256xi32>
    %504 = arith.cmpi sge, %18, %503 : vector<1x256xi32>
    %505 = arith.andi %502, %504 : vector<1x256xi1>
    %c16_i32_168 = arith.constant 16 : i32
    %506 = vector.broadcast %c16_i32_168 : i32 to vector<1x256xi32>
    %507 = arith.cmpi slt, %18, %506 : vector<1x256xi32>
    %508 = arith.andi %505, %507 : vector<1x256xi1>
    %c26 = arith.constant 26 : index
    %c0_169 = arith.constant 0 : index
    %c0_170 = arith.constant 0 : index
    %509 = vector.load %arg2[%c26, %c0_169, %c0_170] : memref<37x4x1xf32, #tpu.memory_space<vmem>>, vector<1x4x1xf32>
    %510 = vector.shape_cast %509 : vector<1x4x1xf32> to vector<4x1xf32>
    %cst_171 = arith.constant 0.000000e+00 : f32
    %511 = vector.shape_cast %508 : vector<1x256xi1> to vector<1x256xi1>
    %512 = vector.broadcast %511 : vector<1x256xi1> to vector<4x256xi1>
    %513 = vector.broadcast %cst_171 : f32 to vector<4x256xf32>
    %514 = arith.select %512, %497, %513 : vector<4x256xi1>, vector<4x256xf32>
    %515 = vector.broadcast %510 : vector<4x1xf32> to vector<4x256xf32>
    %516 = arith.mulf %515, %514 : vector<4x256xf32>
    %517 = arith.addf %496, %516 : vector<4x256xf32>
    %c52_i32 = arith.constant 52 : i32
    %518 = tpu.dynamic_rotate %1 by %c52_i32 dim 1 : vector<4x256xf32>, i32 -> vector<4x256xf32>
    %c0_i32_172 = arith.constant 0 : i32
    %519 = vector.broadcast %c0_i32_172 : i32 to vector<1x256xi32>
    %520 = arith.cmpi sge, %2, %519 : vector<1x256xi32>
    %c64_i32_173 = arith.constant 64 : i32
    %521 = vector.broadcast %c64_i32_173 : i32 to vector<1x256xi32>
    %522 = arith.cmpi slt, %2, %521 : vector<1x256xi32>
    %523 = arith.andi %520, %522 : vector<1x256xi1>
    %c-12_i32_174 = arith.constant -12 : i32
    %524 = vector.broadcast %c-12_i32_174 : i32 to vector<1x256xi32>
    %525 = arith.cmpi sge, %18, %524 : vector<1x256xi32>
    %526 = arith.andi %523, %525 : vector<1x256xi1>
    %c4_i32_175 = arith.constant 4 : i32
    %527 = vector.broadcast %c4_i32_175 : i32 to vector<1x256xi32>
    %528 = arith.cmpi slt, %18, %527 : vector<1x256xi32>
    %529 = arith.andi %526, %528 : vector<1x256xi1>
    %c27 = arith.constant 27 : index
    %c0_176 = arith.constant 0 : index
    %c0_177 = arith.constant 0 : index
    %530 = vector.load %arg2[%c27, %c0_176, %c0_177] : memref<37x4x1xf32, #tpu.memory_space<vmem>>, vector<1x4x1xf32>
    %531 = vector.shape_cast %530 : vector<1x4x1xf32> to vector<4x1xf32>
    %cst_178 = arith.constant 0.000000e+00 : f32
    %532 = vector.shape_cast %529 : vector<1x256xi1> to vector<1x256xi1>
    %533 = vector.broadcast %532 : vector<1x256xi1> to vector<4x256xi1>
    %534 = vector.broadcast %cst_178 : f32 to vector<4x256xf32>
    %535 = arith.select %533, %518, %534 : vector<4x256xi1>, vector<4x256xf32>
    %536 = vector.broadcast %531 : vector<4x1xf32> to vector<4x256xf32>
    %537 = arith.mulf %536, %535 : vector<4x256xf32>
    %538 = arith.addf %517, %537 : vector<4x256xf32>
    %c32 = arith.constant 32 : index
    %c0_179 = arith.constant 0 : index
    %c0_180 = arith.constant 0 : index
    %539 = vector.load %arg2[%c32, %c0_179, %c0_180] : memref<37x4x1xf32, #tpu.memory_space<vmem>>, vector<1x4x1xf32>
    %540 = vector.shape_cast %539 : vector<1x4x1xf32> to vector<4x1xf32>
    %541 = vector.broadcast %540 : vector<4x1xf32> to vector<4x256xf32>
    %542 = arith.mulf %541, %1 : vector<4x256xf32>
    %543 = tpu.concatenate %22, %194, %366, %538, %542 in 0 : vector<4x256xf32>, vector<4x256xf32>, vector<4x256xf32>, vector<4x256xf32>, vector<4x256xf32> -> vector<20x256xf32>
    %c0_181 = arith.constant 0 : index
    %c0_182 = arith.constant 0 : index
    %544 = vector.load %arg3[%c0_181, %c0_182] : memref<20x20xf32, #tpu.memory_space<vmem>>, vector<20x20xf32>
    %cst_183 = arith.constant dense<0.000000e+00> : vector<20x256xf32>
    %545 = tpu.matmul %544, %543, %cst_183 {dimension_numbers = #tpu.dot_dimension_numbers<[1], [0], [0], [1], [0, 0, 1, 1], [], []>} : vector<20x20xf32>, vector<20x256xf32>, vector<20x256xf32> -> vector<20x256xf32>
    %c0_184 = arith.constant 0 : index
    %c0_185 = arith.constant 0 : index
    %546 = vector.load %arg4[%c0_184, %c0_185] : memref<20x1xf32, #tpu.memory_space<vmem>>, vector<20x1xf32>
    %547 = vector.broadcast %546 : vector<20x1xf32> to vector<20x256xf32>
    %548 = arith.addf %545, %547 : vector<20x256xf32>
    %cst_186 = arith.constant 0.000000e+00 : f32
    %549 = vector.broadcast %cst_186 : f32 to vector<20x256xf32>
    %550 = arith.maximumf %548, %549 : vector<20x256xf32>
    %cst_187 = arith.constant dense<0xFF800000> : vector<4xf32>
    %551 = vector.multi_reduction <maximumf>, %1, %cst_187 [1] : vector<4x256xf32> to vector<4xf32>
    %552 = vector.shape_cast %551 : vector<4xf32> to vector<4x1xf32>
    %c0_188 = arith.constant 0 : index
    %c0_189 = arith.constant 0 : index
    %553 = vector.load %arg5[%c0_188, %c0_189] : memref<4x4xf32, #tpu.memory_space<vmem>>, vector<4x4xf32>
    %cst_190 = arith.constant dense<0.000000e+00> : vector<4x1xf32>
    %554 = tpu.matmul %553, %552, %cst_190 {dimension_numbers = #tpu.dot_dimension_numbers<[1], [0], [0], [1], [0, 0, 1, 1], [], []>} : vector<4x4xf32>, vector<4x1xf32>, vector<4x1xf32> -> vector<4x1xf32>
    %c0_191 = arith.constant 0 : index
    %c0_192 = arith.constant 0 : index
    %555 = vector.load %arg6[%c0_191, %c0_192] : memref<4x1xf32, #tpu.memory_space<vmem>>, vector<4x1xf32>
    %556 = arith.addf %554, %555 : vector<4x1xf32>
    %cst_193 = arith.constant 0.000000e+00 : f32
    %557 = vector.broadcast %cst_193 : f32 to vector<4x1xf32>
    %558 = arith.maximumf %556, %557 : vector<4x1xf32>
    %559 = vector.shape_cast %558 : vector<4x1xf32> to vector<4x1xf32>
    %560 = vector.broadcast %559 : vector<4x1xf32> to vector<4x256xf32>
    %561 = tpu.concatenate %1, %550, %560 in 0 : vector<4x256xf32>, vector<20x256xf32>, vector<4x256xf32> -> vector<28x256xf32>
    %c0_194 = arith.constant 0 : index
    %c0_195 = arith.constant 0 : index
    %562 = vector.load %arg7[%c0_194, %c0_195] : memref<49x28xf32, #tpu.memory_space<vmem>>, vector<49x28xf32>
    %cst_196 = arith.constant dense<0.000000e+00> : vector<49x256xf32>
    %563 = tpu.matmul %562, %561, %cst_196 {dimension_numbers = #tpu.dot_dimension_numbers<[1], [0], [0], [1], [0, 0, 1, 1], [], []>} : vector<49x28xf32>, vector<28x256xf32>, vector<49x256xf32> -> vector<49x256xf32>
    %c0_197 = arith.constant 0 : index
    %c0_198 = arith.constant 0 : index
    %564 = vector.load %arg8[%c0_197, %c0_198] : memref<49x1xf32, #tpu.memory_space<vmem>>, vector<49x1xf32>
    %565 = vector.broadcast %564 : vector<49x1xf32> to vector<49x256xf32>
    %566 = arith.addf %563, %565 : vector<49x256xf32>
    %567 = vector.extract_strided_slice %566 {offsets = [0, 0], sizes = [14, 256], strides = [1, 1]} : vector<49x256xf32> to vector<14x256xf32>
    %568 = vector.extract_strided_slice %566 {offsets = [16, 0], sizes = [14, 256], strides = [1, 1]} : vector<49x256xf32> to vector<14x256xf32>
    %569 = vector.extract_strided_slice %566 {offsets = [32, 0], sizes = [14, 256], strides = [1, 1]} : vector<49x256xf32> to vector<14x256xf32>
    %570 = vector.extract_strided_slice %566 {offsets = [48, 0], sizes = [1, 256], strides = [1, 1]} : vector<49x256xf32> to vector<1x256xf32>
    %cst_199 = arith.constant dense<0xFF800000> : vector<1xf32>
    %571 = vector.multi_reduction <maximumf>, %570, %cst_199 [1] : vector<1x256xf32> to vector<1xf32>
    %572 = vector.shape_cast %571 : vector<1xf32> to vector<1x1xf32>
    %573 = vector.broadcast %572 : vector<1x1xf32> to vector<1x256xf32>
    %574 = arith.subf %570, %573 : vector<1x256xf32>
    %575 = math.exp %574 : vector<1x256xf32>
    %cst_200 = arith.constant dense<0.000000e+00> : vector<1xf32>
    %576 = vector.multi_reduction <add>, %575, %cst_200 [1] : vector<1x256xf32> to vector<1xf32>
    %577 = vector.shape_cast %576 : vector<1xf32> to vector<1x1xf32>
    %578 = tpu.reciprocal %577 {approx = true} : vector<1x1xf32> -> vector<1x1xf32>
    %579 = vector.broadcast %578 : vector<1x1xf32> to vector<1x256xf32>
    %580 = arith.mulf %575, %579 : vector<1x256xf32>
    %581 = vector.broadcast %580 : vector<1x256xf32> to vector<14x256xf32>
    %582 = arith.mulf %567, %581 : vector<14x256xf32>
    %cst_201 = arith.constant dense<0.000000e+00> : vector<14xf32>
    %583 = vector.multi_reduction <add>, %582, %cst_201 [1] : vector<14x256xf32> to vector<14xf32>
    %584 = vector.shape_cast %583 : vector<14xf32> to vector<14x1xf32>
    %c0_202 = arith.constant 0 : index
    %c0_203 = arith.constant 0 : index
    %585 = vector.load %arg9[%c0_202, %c0_203] : memref<28x14xf32, #tpu.memory_space<vmem>>, vector<28x14xf32>
    %cst_204 = arith.constant dense<0.000000e+00> : vector<28x1xf32>
    %586 = tpu.matmul %585, %584, %cst_204 {dimension_numbers = #tpu.dot_dimension_numbers<[1], [0], [0], [1], [0, 0, 1, 1], [], []>} : vector<28x14xf32>, vector<14x1xf32>, vector<28x1xf32> -> vector<28x1xf32>
    %c0_205 = arith.constant 0 : index
    %c0_206 = arith.constant 0 : index
    %587 = vector.load %arg10[%c0_205, %c0_206] : memref<28x1xf32, #tpu.memory_space<vmem>>, vector<28x1xf32>
    %588 = arith.addf %586, %587 : vector<28x1xf32>
    %cst_207 = arith.constant dense<0.000000e+00> : vector<1xf32>
    %589 = vector.multi_reduction <add>, %588, %cst_207 [0] : vector<28x1xf32> to vector<1xf32>
    %590 = vector.shape_cast %589 : vector<1xf32> to vector<1x1xf32>
    %cst_208 = arith.constant 2.800000e+01 : f32
    %591 = vector.broadcast %cst_208 : f32 to vector<1x1xf32>
    %592 = arith.divf %590, %591 : vector<1x1xf32>
    %593 = vector.broadcast %592 : vector<1x1xf32> to vector<28x1xf32>
    %594 = arith.subf %588, %593 : vector<28x1xf32>
    %595 = arith.mulf %594, %594 : vector<28x1xf32>
    %cst_209 = arith.constant dense<0.000000e+00> : vector<1xf32>
    %596 = vector.multi_reduction <add>, %595, %cst_209 [0] : vector<28x1xf32> to vector<1xf32>
    %597 = vector.shape_cast %596 : vector<1xf32> to vector<1x1xf32>
    %cst_210 = arith.constant 2.800000e+01 : f32
    %598 = vector.broadcast %cst_210 : f32 to vector<1x1xf32>
    %599 = arith.divf %597, %598 : vector<1x1xf32>
    %600 = vector.broadcast %592 : vector<1x1xf32> to vector<28x1xf32>
    %601 = arith.subf %588, %600 : vector<28x1xf32>
    %cst_211 = arith.constant 9.99999974E-6 : f32
    %602 = vector.broadcast %cst_211 : f32 to vector<1x1xf32>
    %603 = arith.addf %599, %602 : vector<1x1xf32>
    %604 = math.rsqrt %603 : vector<1x1xf32>
    %605 = vector.broadcast %604 : vector<1x1xf32> to vector<28x1xf32>
    %606 = arith.mulf %601, %605 : vector<28x1xf32>
    %c0_212 = arith.constant 0 : index
    %c0_213 = arith.constant 0 : index
    %607 = vector.load %arg11[%c0_212, %c0_213] : memref<28x1xf32, #tpu.memory_space<vmem>>, vector<28x1xf32>
    %608 = arith.mulf %606, %607 : vector<28x1xf32>
    %c0_214 = arith.constant 0 : index
    %c0_215 = arith.constant 0 : index
    %609 = vector.load %arg12[%c0_214, %c0_215] : memref<28x1xf32, #tpu.memory_space<vmem>>, vector<28x1xf32>
    %610 = arith.addf %608, %609 : vector<28x1xf32>
    %611 = arith.negf %610 : vector<28x1xf32>
    %612 = math.exp %611 : vector<28x1xf32>
    %cst_216 = arith.constant 1.000000e+00 : f32
    %613 = vector.broadcast %cst_216 : f32 to vector<28x1xf32>
    %614 = arith.addf %613, %612 : vector<28x1xf32>
    %615 = arith.divf %613, %614 : vector<28x1xf32>
    %cst_217 = arith.constant dense<0.000000e+00> : vector<14xf32>
    %616 = vector.multi_reduction <add>, %569, %cst_217 [1] : vector<14x256xf32> to vector<14xf32>
    %617 = vector.shape_cast %616 : vector<14xf32> to vector<14x1xf32>
    %cst_218 = arith.constant 2.560000e+02 : f32
    %618 = vector.broadcast %cst_218 : f32 to vector<14x1xf32>
    %619 = arith.divf %617, %618 : vector<14x1xf32>
    %cst_219 = arith.constant dense<0xFF800000> : vector<1xf32>
    %620 = vector.multi_reduction <maximumf>, %619, %cst_219 [0] : vector<14x1xf32> to vector<1xf32>
    %621 = vector.shape_cast %620 : vector<1xf32> to vector<1x1xf32>
    %622 = vector.broadcast %621 : vector<1x1xf32> to vector<14x1xf32>
    %623 = arith.subf %619, %622 : vector<14x1xf32>
    %624 = math.exp %623 : vector<14x1xf32>
    %cst_220 = arith.constant dense<0.000000e+00> : vector<1xf32>
    %625 = vector.multi_reduction <add>, %624, %cst_220 [0] : vector<14x1xf32> to vector<1xf32>
    %626 = vector.shape_cast %625 : vector<1xf32> to vector<1x1xf32>
    %627 = tpu.reciprocal %626 {approx = true} : vector<1x1xf32> -> vector<1x1xf32>
    %628 = vector.broadcast %627 : vector<1x1xf32> to vector<14x1xf32>
    %629 = arith.mulf %624, %628 : vector<14x1xf32>
    %630 = vector.broadcast %629 : vector<14x1xf32> to vector<14x256xf32>
    %631 = arith.mulf %568, %630 : vector<14x256xf32>
    %cst_221 = arith.constant dense<0.000000e+00> : vector<256xf32>
    %632 = vector.multi_reduction <add>, %631, %cst_221 [0] : vector<14x256xf32> to vector<256xf32>
    %633 = vector.shape_cast %632 : vector<256xf32> to vector<1x256xf32>
    %634 = arith.negf %633 : vector<1x256xf32>
    %635 = math.exp %634 : vector<1x256xf32>
    %cst_222 = arith.constant 1.000000e+00 : f32
    %636 = vector.broadcast %cst_222 : f32 to vector<1x256xf32>
    %637 = arith.addf %636, %635 : vector<1x256xf32>
    %638 = arith.divf %636, %637 : vector<1x256xf32>
    %639 = vector.broadcast %615 : vector<28x1xf32> to vector<28x256xf32>
    %640 = vector.broadcast %638 : vector<1x256xf32> to vector<28x256xf32>
    %641 = arith.addf %639, %640 : vector<28x256xf32>
    %642 = arith.mulf %561, %641 : vector<28x256xf32>
    %c0_223 = arith.constant 0 : index
    %c0_224 = arith.constant 0 : index
    %643 = vector.load %arg13[%c0_223, %c0_224] : memref<4x28xf32, #tpu.memory_space<vmem>>, vector<4x28xf32>
    %cst_225 = arith.constant dense<0.000000e+00> : vector<4x256xf32>
    %644 = tpu.matmul %643, %642, %cst_225 {dimension_numbers = #tpu.dot_dimension_numbers<[1], [0], [0], [1], [0, 0, 1, 1], [], []>} : vector<4x28xf32>, vector<28x256xf32>, vector<4x256xf32> -> vector<4x256xf32>
    %c0_226 = arith.constant 0 : index
    %c0_227 = arith.constant 0 : index
    %645 = vector.load %arg14[%c0_226, %c0_227] : memref<4x1xf32, #tpu.memory_space<vmem>>, vector<4x1xf32>
    %646 = vector.broadcast %645 : vector<4x1xf32> to vector<4x256xf32>
    %647 = arith.addf %644, %646 : vector<4x256xf32>
    %cst_228 = arith.constant 0.000000e+00 : f32
    %648 = vector.broadcast %cst_228 : f32 to vector<4x256xf32>
    %649 = arith.maximumf %647, %648 : vector<4x256xf32>
    %c0_229 = arith.constant 0 : index
    %c0_230 = arith.constant 0 : index
    %c0_231 = arith.constant 0 : index
    %650 = vector.load %arg15[%c0_229, %c0_230, %c0_231] : memref<1x4x256xf32, #tpu.memory_space<vmem>>, vector<1x4x256xf32>
    %651 = vector.shape_cast %650 : vector<1x4x256xf32> to vector<4x256xf32>
    %652 = vector.shape_cast %649 : vector<4x256xf32> to vector<1x4x256xf32>
    tpu.vector_store %arg15[%c0_229, %c0_230, %c0_231], %652 {strides = array<i32>} : memref<1x4x256xf32, #tpu.memory_space<vmem>>, vector<1x4x256xf32>,
    return
  }
  func.func @transform_0(%arg0: i32) -> (i32, i32, i32) {
    %c0_i32 = arith.constant 0 : i32
    %c0_i32_0 = arith.constant 0 : i32
    %c0_i32_1 = arith.constant 0 : i32
    return %arg0, %c0_i32, %c0_i32_0 : i32, i32, i32
  }
  func.func @transform_1(%arg0: i32) -> (i32, i32, i32) {
    %c0_i32 = arith.constant 0 : i32
    %c0_i32_0 = arith.constant 0 : i32
    %c0_i32_1 = arith.constant 0 : i32
    %c0_i32_2 = arith.constant 0 : i32
    return %c0_i32, %c0_i32_0, %c0_i32_1 : i32, i32, i32
  }
  func.func @transform_2(%arg0: i32) -> (i32, i32) {
    %c0_i32 = arith.constant 0 : i32
    %c0_i32_0 = arith.constant 0 : i32
    %c0_i32_1 = arith.constant 0 : i32
    return %c0_i32, %c0_i32_0 : i32, i32
  }
  func.func @transform_3(%arg0: i32) -> (i32, i32) {
    %c0_i32 = arith.constant 0 : i32
    %c0_i32_0 = arith.constant 0 : i32
    %c0_i32_1 = arith.constant 0 : i32
    return %c0_i32, %c0_i32_0 : i32, i32
  }
  func.func @transform_4(%arg0: i32) -> (i32, i32) {
    %c0_i32 = arith.constant 0 : i32
    %c0_i32_0 = arith.constant 0 : i32
    %c0_i32_1 = arith.constant 0 : i32
    return %c0_i32, %c0_i32_0 : i32, i32
  }
  func.func @transform_5(%arg0: i32) -> (i32, i32) {
    %c0_i32 = arith.constant 0 : i32
    %c0_i32_0 = arith.constant 0 : i32
    %c0_i32_1 = arith.constant 0 : i32
    return %c0_i32, %c0_i32_0 : i32, i32
  }
  func.func @transform_6(%arg0: i32) -> (i32, i32) {
    %c0_i32 = arith.constant 0 : i32
    %c0_i32_0 = arith.constant 0 : i32
    %c0_i32_1 = arith.constant 0 : i32
    return %c0_i32, %c0_i32_0 : i32, i32
  }
  func.func @transform_7(%arg0: i32) -> (i32, i32) {
    %c0_i32 = arith.constant 0 : i32
    %c0_i32_0 = arith.constant 0 : i32
    %c0_i32_1 = arith.constant 0 : i32
    return %c0_i32, %c0_i32_0 : i32, i32
  }
  func.func @transform_8(%arg0: i32) -> (i32, i32) {
    %c0_i32 = arith.constant 0 : i32
    %c0_i32_0 = arith.constant 0 : i32
    %c0_i32_1 = arith.constant 0 : i32
    return %c0_i32, %c0_i32_0 : i32, i32
  }
  func.func @transform_9(%arg0: i32) -> (i32, i32) {
    %c0_i32 = arith.constant 0 : i32
    %c0_i32_0 = arith.constant 0 : i32
    %c0_i32_1 = arith.constant 0 : i32
    return %c0_i32, %c0_i32_0 : i32, i32
  }
  func.func @transform_10(%arg0: i32) -> (i32, i32) {
    %c0_i32 = arith.constant 0 : i32
    %c0_i32_0 = arith.constant 0 : i32
    %c0_i32_1 = arith.constant 0 : i32
    return %c0_i32, %c0_i32_0 : i32, i32
  }
  func.func @transform_11(%arg0: i32) -> (i32, i32) {
    %c0_i32 = arith.constant 0 : i32
    %c0_i32_0 = arith.constant 0 : i32
    %c0_i32_1 = arith.constant 0 : i32
    return %c0_i32, %c0_i32_0 : i32, i32
  }
  func.func @transform_12(%arg0: i32) -> (i32, i32) {
    %c0_i32 = arith.constant 0 : i32
    %c0_i32_0 = arith.constant 0 : i32
    %c0_i32_1 = arith.constant 0 : i32
    return %c0_i32, %c0_i32_0 : i32, i32
  }
  func.func @transform_13(%arg0: i32) -> (i32, i32) {
    %c0_i32 = arith.constant 0 : i32
    %c0_i32_0 = arith.constant 0 : i32
    %c0_i32_1 = arith.constant 0 : i32
    return %c0_i32, %c0_i32_0 : i32, i32
  }
  func.func @transform_14(%arg0: i32) -> (i32, i32, i32) {
    %c0_i32 = arith.constant 0 : i32
    %c0_i32_0 = arith.constant 0 : i32
    %c0_i32_1 = arith.constant 0 : i32
    return %arg0, %c0_i32, %c0_i32_0 : i32, i32, i32
  }
}

</mosaic_0001>

<bundles_post_ra>
// kernel: amaca_forward.1
= control target key start
LH: loop header
LB: loop body
LE: loop exit
PB: predicated region body
PF: predicated region fallthrough
CT: control target
= control target key end

     0   :  { %s2396_s29 = smov 0   ;;  %s3114_s0 = inlined_call_operand.vmem [shape: f32[2,4,256], index: 0, kind: input, shape index: {}]   ;;  %s3115_s1 = inlined_call_operand.vmem [shape: f32[37,4,1], index: 1, kind: input, shape index: {}]   ;;  %s3116_s2 = inlined_call_operand.vmem [shape: f32[20,20], index: 2, kind: input, shape index: {}]   ;;  %s3117_s3 = inlined_call_operand.vmem [shape: f32[20,1], index: 3, kind: input, shape index: {}]   ;;  %s3118_s4 = inlined_call_operand.vmem [shape: f32[4,4], index: 4, kind: input, shape index: {}]   ;;  %s3119_s5 = inlined_call_operand.vmem [shape: f32[4,1], index: 5, kind: input, shape index: {}]   ;;  %s3120_s6 = inlined_call_operand.vmem [shape: f32[49,28], index: 6, kind: input, shape index: {}]   ;;  %s3121_s7 = inlined_call_operand.vmem [shape: f32[49,1], index: 7, kind: input, shape index: {}]   ;;  %s3122_s8 = inlined_call_operand.vmem [shape: f32[28,14], index: 8, kind: input, shape index: {}]   ;;  %s3123_s9 = inlined_call_operand.vmem [shape: f32[28,1], index: 9, kind: input, shape index: {}]   ;;  %s3124_s10 = inlined_call_operand.vmem [shape: f32[28,1], index: 10, kind: input, shape index: {}]   ;;  %s3125_s11 = inlined_call_operand.vmem [shape: f32[28,1], index: 11, kind: input, shape index: {}]   ;;  %s3126_s12 = inlined_call_operand.vmem [shape: f32[4,28], index: 12, kind: input, shape index: {}]   ;;  %s3127_s13 = inlined_call_operand.vmem [shape: f32[4,1], index: 13, kind: input, shape index: {}]   ;;  %s3128_s14 = inlined_call_operand.vmem [shape: f32[2,4,256], index: 14, kind: output, shape index: {}]  }
   0x1 LB: > { %s2106_s30 = sadd.s32 4294967295, %s2304_s29   ;;  %p2110_p0 = scmp.ge.s32.totalorder %s2304_s29, 1  ;;  %s2304_s29 = sphi %s2396_s29, %s24_s29  }
   0x2   : > { %p412_p1 = scmp.lt.s32.totalorder %s2304_s29, 3 }
   0x4   : > { %p413_p2 = pnand %p2110_p0, %p412_p1 }
   0x5   : > { %v2116_v0 = vld [vmem:[%s3115_s1 + $0x8] sm:$0xf] (!%p413_p2)  ;;  %p458_p3 = scmp.lt.s32.totalorder (!%p413_p2), %s2106_s30, 1  ;;  %v2306_v1 = vmov (!%p413_p2), 0   ;;  %v2133_v2 = vld [vmem:[%s3115_s1 + $0x4c] sm:$0xf] (!%p413_p2)  ;;  %v469_v61 = vlaneseq (!%p413_p2) }
   0x6   : > { %416 = sbr.rel (%p413_p2) target bundleno = 1895 (0x767), region = 76  ;;  %2258 = vset.pattern.permute.xlu1 (!%p413_p2), %v2306_v1  ;;  %2257 = vset.pattern.permute.xlu0 (!%p413_p2), %v2306_v1  ;;  %vm3129_vm0 = vcmask (!%p413_p2), 1043456   ;;  %v2134_v4 = vld [vmem:[%s3115_s1 + $0x50] sm:$0xf] (!%p413_p2)  ;;  %v2117_v9 = vld [vmem:[%s3115_s1 + $0xc] sm:$0xf] (!%p413_p2) }
   0x7   : > { %568 = vperm.xlu1 (!%p413_p2), %2258, %v2116_v0   ;;  %v2124_v10 = vld [vmem:[%s3115_s1 + $0x28] sm:$0xf] (!%p413_p2)  ;;  %v2125_v11 = vld [vmem:[%s3115_s1 + $0x2c] sm:$0xf] (!%p413_p2)  ;;  %v2135_v12 = vld [vmem:[%s3115_s1 + $0x54] sm:$0xf] (!%p413_p2) }
   0x8   : > { %v2307_v13 = vmov (!%p413_p2), 0.0   ;;  %vm2308_vm1 = vmmov (!%p413_p2), 0   ;;  %v2118_v14 = vld [vmem:[%s3115_s1 + $0x10] sm:$0xf] (!%p413_p2)  ;;  %v2115_v16 = vld [vmem:[%s3115_s1 + $0x4] sm:$0xf] (!%p413_p2) }
   0x9   : > { %2185 = vmatprep.subr.mxu1 (!%p413_p2), %v2307_v13  ;;  %1299 = vmatprep.mubr.f32.mxu0 (!%p413_p2), %v2307_v13  ;;  %v2126_v15 = vld [vmem:[%s3115_s1 + $0x30] sm:$0xf] (!%p413_p2)  ;;  %v2136_v17 = vld [vmem:[%s3115_s1 + $0x58] sm:$0xf] (!%p413_p2)  ;;  %s2309_s28 = smov (!%p413_p2), 64   ;;  %s2310_s15 = smov (!%p413_p2), 68  }
   0xa   : > { %2187 = vmatprep.mubr.msk.f32.mxu1 (!%p413_p2), %vm2308_vm1, %v2307_v13  ;;  %s2311_s16 = smov (!%p413_p2), 76   ;;  %v2119_v18 = vld [vmem:[%s3115_s1 + $0x14] sm:$0xf] (!%p413_p2)  ;;  %v2137_v19 = vld [vmem:[%s3115_s1 + $0x5c] sm:$0xf] (!%p413_p2)  ;;  %s2313_s25 = smov (!%p413_p2), 8  }
   0xb   : > { %981 = vperm.xlu1 (!%p413_p2), %2258, %v2133_v2   ;;  %v2127_v20 = vld [vmem:[%s3115_s1 + $0x34] sm:$0xf] (!%p413_p2)  ;;  %s2314_s26 = smov (!%p413_p2), 52   ;;  %v2128_v21 = vld [vmem:[%s3115_s1 + $0x38] sm:$0xf] (!%p413_p2)  ;;  %s2316_s18 = smov (!%p413_p2), 120  }
   0xc   : > { %v2120_v22 = vld [vmem:[%s3115_s1 + $0x18] sm:$0xf] (!%p413_p2)  ;;  %v2138_v23 = vld [vmem:[%s3115_s1 + $0x60] sm:$0xf] (!%p413_p2)  ;;  %v2121_v24 = vld [vmem:[%s3115_s1 + $0x1c] sm:$0xf] (!%p413_p2) }
   0xd   : > { %s3156_s30 = smov (!%p458_p3, %s2106_s30), 1  ;;  %v2139_v25 = vld [vmem:[%s3115_s1 + $0x64] sm:$0xf]  ;;  %v2130_v26 = vld [vmem:[%s3115_s1 + $0x40] sm:$0xf]  ;;  %v1202_v39 = vld [vmem:[%s3117_s3 + $0x8] sm:$0xff] }
   0xe   : > { %s2175_s19 = sshll.u32 %s3156_s30, 3  ;;  %v2129_v27 = vld [vmem:[%s3115_s1 + $0x3c] sm:$0xf]  ;;  %v2122_v28 = vld [vmem:[%s3115_s1 + $0x20] sm:$0xf]  ;;  %vm1331_vm2 = vcmask 31744  }
   0xf   : > { %s462_s22 = scalar_lea.vmem %s3114_s0, %s2175_s19  ;;  %1000 = vperm.xlu1 %2258, %v2134_v4   ;;  %v2140_v29 = vld [vmem:[%s3115_s1 + $0x68] sm:$0xf]  ;;  %v2123_v30 = vld [vmem:[%s3115_s1 + $0x24] sm:$0xf]  ;;  %v2141_v31 = vld [vmem:[%s3115_s1 + $0x6c] sm:$0xf]  ;;  %s467_s27 = scalar_lea.vmem %s3128_s14, %s2175_s19 }
  0x10   : > { %v2418_v3 = vld [vmem:[%s462_s22] sm:$0xff]  ;;  %s2312_s22 = smov 60   ;;  %v2132_v35 = vld [vmem:[%s3115_s1 + $0x48] sm:$0xf]  ;;  %v1203_v36 = vld [vmem:[%s3117_s3 + $0x10] sm:$0xf] }
  0x11   : > { %v2425_v5 = vcombine.high %v2418_v3, %v2418_v3  ;;  %v1324_v6 = vsel %vm3129_vm0, %v2418_v3, -inf  ;;  %v496_v32 = vld [vmem:[%s3115_s1] sm:$0xf]  ;;  %v2131_v33 = vld [vmem:[%s3115_s1 + $0x44] sm:$0xf]  ;;  %v2576_v1 = vand.u32 127, %v469_v61 }
  0x12   : > { %v1201_v34 = vld [vmem:[%s3117_s3] sm:$0xff]  ;;  %v1451_v38 = vld [vmem:[%s3121_s7 + $0x30] sm:$0x1] }
  0x13   : > { %v1325_v7 = vsel %vm3129_vm0, %v2425_v5, -inf  ;;  %600 = vperm.xlu1 %2258, %v2117_v9   ;;  %v2142_v37 = vld [vmem:[%s3115_s1 + $0x80] sm:$0xf]  ;;  %vm547_vm3 = vcmp.lt.s32.totalorder %v2576_v1, 64  ;;  %vm956_vm6 = vcmp.lt.s32.totalorder %v2576_v1, 76  ;;  %vm511_vm8 = vcmp.lt.s32.totalorder %v2576_v1, 68 }
  0x14   : > { %v1326_v8 = vmax.f32 %v1324_v6, %v1325_v7  ;;  %v1329_v52 = vld [vmem:[%s3118_s4] sm:$0xf]  ;;  %v2579_v6 = vadd.s32 128, %v2576_v1  ;;  %vm514_vm9 = vcmp.ge.s32.totalorder %v2576_v1, 64  ;;  %vm579_vm14 = vcmp.lt.s32.totalorder %v2576_v1, 60 }
  0x16   : > { %1327 = vmax.xlane.f32.xlu0 %v1326_v8  ;;  %v2584_v9 = vand.u32 15, %v2579_v6  ;;  %vm960_vm5 = vcmp.ge.s32.totalorder %v2579_v6, 192 }
  0x17   : > { %774 = vperm.xlu1 %2258, %v2124_v10   ;;  %v2588_v10 = vand.u32 15, %v2576_v1 }
  0x18   : > { %vm964_vm4 = vcmp.ge.s32.totalorder %v2584_v9, 12  ;;  %vm521_vm11 = vcmp.ge.s32.totalorder %v2584_v9, 4  ;;  %vm587_vm15 = vcmp.lt.s32.totalorder %v2584_v9, 12 }
  0x19   : > { %vm966_vm7 = vmand %vm960_vm5, %vm964_vm4  ;;  %vm520_vm10 = vcmp.ge.s32.totalorder %v2588_v10, 4  ;;  %vm586_vm13 = vcmp.lt.s32.totalorder %v2588_v10, 12 }
  0x1a   : > { %vm2617_vm12 = vmand %vm514_vm9, %vm520_vm10 }
  0x1b   : > { %793 = vperm.xlu1 %2258, %v2125_v11   ;;  %vm588_vm1 = vmand %vm514_vm9, %vm586_vm13 }
  0x1f   : > { %1032 = vperm.xlu1 %2258, %v2135_v12  }
  0x23   : > { %632 = vperm.xlu1 %2258, %v2118_v14  }
  0x27   : > { %825 = vperm.xlu1 %2258, %v2126_v15  }
  0x2b   : > { %1060 = vperm.xlu1 %2258, %v2136_v17  }
  0x2c   : > { %538 = vperm.xlu0 %2257, %v2115_v16  }
  0x2f   : > { %507 = vrot.lane.b32.xlu1 %v2418_v3, %s2310_s15 }
  0x30   : > { %543 = vrot.lane.b32.xlu0 %v2418_v3, %s2309_s28 }
  0x33   : > { %509 = vrot.lane.b32.xlu1 %v2425_v5, %s2310_s15  ;;  %s2315_s15 = smov 4  }
  0x34   : > { %952 = vrot.lane.b32.xlu0 %v2418_v3, %s2311_s16 }
  0x37   : > { %545 = vrot.lane.b32.xlu1 %v2425_v5, %s2309_s28 }
  0x38   : > { %643 = vperm.xlu0 %2257, %v2119_v18  }
  0x3b   : > { %954 = vrot.lane.b32.xlu1 %v2425_v5, %s2311_s16 }
  0x3c   : > { %1071 = vperm.xlu0 %2257, %v2137_v19  }
  0x3f   : > { %846 = vperm.xlu1 %2258, %v2127_v20  }
  0x40   : > { %577 = vrot.lane.b32.xlu0 %v2425_v5, %s2312_s22 }
  0x43   : > { %575 = vrot.lane.b32.xlu1 %v2418_v3, %s2312_s22  ;;  %s2317_s22 = smov 12  }
  0x44   : > { %747 = vrot.lane.b32.xlu0 %v2425_v5, %s2313_s25 }
  0x47   : > { %745 = vrot.lane.b32.xlu1 %v2418_v3, %s2313_s25 }
  0x48   : > { %1009 = vrot.lane.b32.xlu0 %v2425_v5, %s2314_s26 }
  0x4b   : > { %1007 = vrot.lane.b32.xlu1 %v2418_v3, %s2314_s26 }
  0x4c   : > { %857 = vperm.xlu0 %2257, %v2128_v21  }
  0x4f   : > { %671 = vperm.xlu1 %2258, %v2120_v22  }
  0x50   : > { %607 = vrot.lane.b32.xlu0 %v2418_v3, %s2315_s15 }
  0x53   : > { %1099 = vperm.xlu1 %2258, %v2138_v23  }
  0x54   : > { %800 = vrot.lane.b32.xlu0 %v2418_v3, %s2316_s18 }
  0x57   : > { %609 = vrot.lane.b32.xlu1 %v2425_v5, %s2315_s15  ;;  %s2318_s15 = smov 124  }
  0x58   : > { %1039 = vrot.lane.b32.xlu0 %v2418_v3, %s2317_s22 }
  0x5b   : > { %802 = vrot.lane.b32.xlu1 %v2425_v5, %s2316_s18  ;;  %s2319_s18 = smov 116  }
  0x5c   : > { %696 = vperm.xlu0 %2257, %v2121_v24  }
  0x5f   : > { %1041 = vrot.lane.b32.xlu1 %v2425_v5, %s2317_s22 }
  0x60   : > { %1123 = vperm.xlu0 %2257, %v2139_v25  }
  0x63   : > { %878 = vperm.xlu1 %2258, %v2129_v27  }
  0x64   : > { %903 = vperm.xlu0 %2257, %v2130_v26  }
  0x67   : > { %717 = vperm.xlu1 %2258, %v2122_v28  }
  0x68   : > { %650 = vrot.lane.b32.xlu0 %v2418_v3, %s2318_s15 }
  0x6b   : > { %1144 = vperm.xlu1 %2258, %v2140_v29  }
  0x6c   : > { %1078 = vrot.lane.b32.xlu0 %v2418_v3, %s2319_s18 }
  0x6f   : > { %652 = vrot.lane.b32.xlu1 %v2425_v5, %s2318_s15 }
  0x70   : > { %738 = vperm.xlu0 %2257, %v2123_v30  }
  0x73   : > { %1080 = vrot.lane.b32.xlu1 %v2425_v5, %s2319_s18 }
  0x74   : > { %1165 = vperm.xlu0 %2257, %v2141_v31  }
  0x77   : > { %924 = vperm.xlu1 %2258, %v2131_v33  }
  0x78   : > { %499 = vperm.xlu0 %2257, %v496_v32  }
  0x7b   : > { %945 = vperm.xlu1 %2258, %v2132_v35  }
  0x7c   : > { %1206 = vperm.xlu0 %2257, %v1201_v34  }
  0x7f   : > { %1176 = vperm.xlu1 %2258, %v2142_v37  }
  0x80   : > { %1216 = vperm.xlu0 %2257, %v1203_v36  }
  0x83   : > { %1211 = vperm.xlu1 %2258, %v1202_v39  }
  0x84   : > { %1484 = vperm.xlu0 %2257, %v1451_v38  }
  0x86   : > { %v2546_v40 = vpop.permute.xlu1 %568 }
  0x8a   : > { %v982_v41 = vpop.permute.xlu1 %981 }
  0x8b   : > { %v984_v42 = vmul.f32 0.0, %v982_v41 }
  0x8e   : > { %v1001_v43 = vpop.permute.xlu1 %1000 }
  0x8f   : > { %v1003_v44 = vmul.f32 0.0, %v1001_v43 }
  0x91   : > { %v1005_v45 = vadd.f32 %v1003_v44, %v984_v42 }
  0x92   : > { %v2548_v46 = vpop.permute.xlu1 %600 }
  0x96   : > { %v2550_v47 = vpop.permute.xlu1 %774 }
  0x97   : > { %v777_v49 = vmul.f32 0.0, %v2550_v47 }
  0x9a   : > { %v2552_v48 = vpop.permute.xlu1 %793 }
  0x9b   : > { %v796_v50 = vmul.f32 0.0, %v2552_v48 }
  0x9d   : > { %v798_v51 = vadd.f32 %v796_v50, %v777_v49 }
  0x9e   : > { %v2559_v53 = vpop.permute.xlu1 %1032 }
  0x9f   : > { %v1035_v55 = vmul.f32 0.0, %v2559_v53 }
  0xa1   : > { %v2563_v56 = vadd.f32 %v1035_v55, %v1005_v45 }
  0xa2   : > { %v2566_v57 = vpop.permute.xlu1 %632 }
  0xa3   : > { %v1328_v54 = vpop.xlane.xlu0 %1327 }
  0xa4   : > { %2186 = vmatpush3.msk.msra.mxu1 %vm3129_vm0, %v1328_v54  ;;  %vm1082_vm0 = vcmp.lt.s32.totalorder %v2576_v1, 116 }
  0xa5   : > { %2188 = vmatmul.mubr.msk.f32.vlgmr.msra.gmra.mrb[0].mxu1 %vm1331_vm2, %v1329_v52  ;;  %vm749_vm2 = vcmp.lt.s32.totalorder %v2576_v1, 8 }
  0xa6   : > { %1581 = vmatprep.mubr.f32.mxu1 %v2307_v13  ;;  %v2568_v58 = vpop.permute.xlu1 %825 }
  0xa7   : > { %v828_v60 = vmul.f32 0.0, %v2568_v58 }
  0xa9   : > { %v2571_v62 = vadd.f32 %v828_v60, %v798_v51 }
  0xaa   : > { %v2573_v63 = vpop.permute.xlu1 %1060 }
  0xab   : > { %v539_v59 = vpop.permute.xlu0 %538 }
  0xae   : > { %v508_v2 = vpop.permute.xlu1 %507 }
  0xaf   : > { %v544_v0 = vpop.permute.xlu0 %543 }
  0xb2   : > { %v510_v7 = vpop.permute.xlu1 %509 }
  0xb3   : > { %v953_v4 = vpop.permute.xlu0 %952  ;;  %v2621_v21 = vsel %vm511_vm8, %v508_v2, %v510_v7  ;;  %v2623_v22 = vsel %vm511_vm8, %v510_v7, %v508_v2  ;;  %vm1011_vm8 = vcmp.lt.s32.totalorder %v2576_v1, 52 }
  0xb4   : > { %v534_v30 = vsel %vm2617_vm12, %v2623_v22, 0.0  ;;  %v535_v31 = vsel %vm521_vm11, %v2621_v21, 0.0  ;;  %vm611_vm12 = vcmp.lt.s32.totalorder %v2576_v1, 4 }
  0xb5   : > { %v541_v36 = vmul.f32 %v539_v59, %v534_v30  ;;  %v542_v37 = vmul.f32 %v539_v59, %v535_v31  ;;  %v797_v59 = vmul.f32 %v2552_v48, %v2418_v3 }
  0xb6   : > { %v546_v11 = vpop.permute.xlu1 %545 }
  0xb7   : > { %v2581_v8 = vpop.permute.xlu0 %643  ;;  %v2596_v14 = vsel %vm547_vm3, %v546_v11, %v544_v0  ;;  %v2627_v25 = vsel %vm547_vm3, %v544_v0, %v546_v11 }
  0xb8   : > { %v997_v15 = vsel %vm960_vm5, %v2596_v14, 0.0  ;;  %v564_v26 = vsel %vm514_vm9, %v2596_v14, 0.0  ;;  %v572_v33 = vmul.f32 %v2546_v40, %v2627_v25 }
  0xb9   : > { %v1004_v23 = vmul.f32 %v1001_v43, %v997_v15  ;;  %v571_v32 = vmul.f32 %v2546_v40, %v564_v26 }
  0xba   : > { %v955_v16 = vpop.permute.xlu1 %954  ;;  %v574_v42 = vadd.f32 %v572_v33, %v542_v37 }
  0xbb   : > { %v2590_v12 = vpop.permute.xlu0 %1071  ;;  %v2609_v18 = vsel %vm956_vm6, %v955_v16, %v953_v4  ;;  %vm757_vm6 = vcmp.ge.s32.totalorder %v2584_v9, 8  ;;  %v573_v43 = vadd.f32 %v571_v32, %v541_v36 }
  0xbc   : > { %v978_v19 = vsel %vm966_vm7, %v2609_v18, 0.0  ;;  %vm1019_vm7 = vcmp.lt.s32.totalorder %v2584_v9, 4 }
  0xbd   : > { %v985_v24 = vmul.f32 %v982_v41, %v978_v19  ;;  %vm1021_vm9 = vmand %vm960_vm5, %vm1019_vm7  ;;  %vm804_vm5 = vcmp.lt.s32.totalorder %v2576_v1, 120 }
  0xbe   : > { %v2632_v27 = vpop.permute.xlu1 %846 }
  0xbf   : > { %v578_v17 = vpop.permute.xlu0 %577  ;;  %v1006_v29 = vadd.f32 %v1004_v23, %v985_v24 }
  0xc2   : > { %v576_v34 = vpop.permute.xlu1 %575 }
  0xc3   : > { %v2634_v28 = vpop.permute.xlu0 %747  ;;  %v2652_v38 = vsel %vm579_vm14, %v576_v34, %v578_v17  ;;  %v2654_v39 = vsel %vm579_vm14, %v578_v17, %v576_v34  ;;  %vm812_vm14 = vcmp.lt.s32.totalorder %v2584_v9, 8 }
  0xc4   : > { %v596_v41 = vsel %vm588_vm1, %v2654_v39, 0.0  ;;  %v597_v40 = vsel %vm587_vm15, %v2652_v38, 0.0  ;;  %vm1043_vm1 = vcmp.lt.s32.totalorder %v2576_v1, 12 }
  0xc5   : > { %v603_v44 = vmul.f32 %v2548_v46, %v596_v41  ;;  %v604_v45 = vmul.f32 %v2548_v46, %v597_v40 }
  0xc6   : > { %v746_v49 = vpop.permute.xlu1 %745 }
  0xc7   : > { %v1010_v35 = vpop.permute.xlu0 %1009  ;;  %v605_v51 = vadd.f32 %v603_v44, %v573_v43  ;;  %v606_v52 = vadd.f32 %v604_v45, %v574_v42  ;;  %v751_v54 = vsel %vm749_vm2, %v2634_v28, %v746_v49 }
  0xc8   : > { %v771_v55 = vsel %vm757_vm6, %v751_v54, 0.0 }
  0xc9   : > { %v778_v46 = vmul.f32 %v2550_v47, %v771_v55 }
  0xca   : > { %v1008_v60 = vpop.permute.xlu1 %1007 }
  0xcb   : > { %v2664_v50 = vpop.permute.xlu0 %857  ;;  %v799_v2 = vadd.f32 %v797_v59, %v778_v46  ;;  %v2680_v4 = vsel %vm1011_vm8, %v1010_v35, %v1008_v60  ;;  %vm963_vm8 = vcmp.ge.s32.totalorder %v2588_v10, 12 }
  0xcc   : > { %v1029_v7 = vsel %vm1021_vm9, %v2680_v4, 0.0  ;;  %vm756_vm9 = vcmp.ge.s32.totalorder %v2588_v10, 8 }
  0xcd   : > { %v1036_v11 = vmul.f32 %v2559_v53, %v1029_v7  ;;  %v842_v55 = vsel %vm756_vm9, %v751_v54, 0.0 }
  0xce   : > { %v2684_v15 = vpop.permute.xlu1 %671 }
  0xcf   : > { %v608_v0 = vpop.permute.xlu0 %607  ;;  %v1038_v48 = vadd.f32 %v1036_v11, %v1006_v29  ;;  %v647_v11 = vmul.f32 %v2581_v8, %v2425_v5 }
  0xd2   : > { %v2686_v17 = vpop.permute.xlu1 %1099 }
  0xd3   : > { %v801_v16 = vpop.permute.xlu0 %800 }
  0xd6   : > { %v610_v19 = vpop.permute.xlu1 %609 }
  0xd7   : > { %v1040_v47 = vpop.permute.xlu0 %1039  ;;  %v612_v23 = vsel %vm611_vm12, %v608_v0, %v610_v19  ;;  %v613_v24 = vsel %vm611_vm12, %v610_v19, %v608_v0  ;;  %vm679_vm12 = vcmp.lt.s32.totalorder %v2579_v6, 192 }
  0xd8   : > { %v628_v26 = vsel %vm520_vm10, %v613_v24, 0.0  ;;  %v629_v53 = vsel %vm521_vm11, %v612_v23, 0.0 }
  0xd9   : > { %v635_v29 = vmul.f32 %v2566_v57, %v628_v26  ;;  %v636_v30 = vmul.f32 %v2566_v57, %v629_v53  ;;  %v860_v53 = vmul.f32 %v2664_v50, %v2418_v3 }
  0xda   : > { %v803_v31 = vpop.permute.xlu1 %802 }
  0xdb   : > { %v2689_v20 = vpop.permute.xlu0 %696  ;;  %v2701_v33 = vadd.f32 %v635_v29, %v605_v51  ;;  %v2703_v34 = vadd.f32 %v636_v30, %v606_v52  ;;  %v805_v35 = vsel %vm804_vm5, %v801_v16, %v803_v31  ;;  %v750_v52 = vsel %vm749_vm2, %v746_v49, %v2634_v28 }
  0xdc   : > { %v822_v36 = vsel %vm812_vm14, %v805_v35, 0.0  ;;  %vm811_vm2 = vcmp.lt.s32.totalorder %v2588_v10, 8  ;;  %v1140_v29 = vsel %vm547_vm3, %v2596_v14, 0.0  ;;  %v861_v30 = vmul.f32 %v2664_v50, %v2425_v5 }
  0xdd   : > { %v829_v37 = vmul.f32 %v2568_v58, %v822_v36  ;;  %v734_v36 = vsel %vm586_vm13, %v2652_v38, 0.0 }
  0xde   : > { %v1042_v57 = vpop.permute.xlu1 %1041 }
  0xdf   : > { %v2699_v32 = vpop.permute.xlu0 %1123  ;;  %v831_v40 = vadd.f32 %v829_v37, %v799_v2  ;;  %v1044_v42 = vsel %vm1043_vm1, %v1040_v47, %v1042_v57  ;;  %v1045_v43 = vsel %vm1043_vm1, %v1042_v57, %v1040_v47  ;;  %v843_v2 = vsel %vm757_vm6, %v750_v52, 0.0  ;;  %vm2754_vm6 = vmand %vm547_vm3, %vm963_vm8 }
  0xe0   : > { %v1056_v44 = vsel %vm963_vm8, %v1045_v43, 0.0  ;;  %v1057_v45 = vsel %vm964_vm4, %v1044_v42, 0.0  ;;  %vm2739_vm4 = vmand %vm679_vm12, %vm521_vm11  ;;  %vm1018_vm1 = vcmp.lt.s32.totalorder %v2588_v10, 4  ;;  %v850_v54 = vmul.f32 %v2632_v27, %v843_v2 }
  0xe1   : > { %v1063_v51 = vmul.f32 %v2573_v63, %v1056_v44  ;;  %v1064_v58 = vmul.f32 %v2573_v63, %v1057_v45  ;;  %v849_v63 = vmul.f32 %v2632_v27, %v842_v55  ;;  %vm654_vm11 = vcmp.lt.s32.totalorder %v2576_v1, 124  ;;  %vm2773_vm8 = vmand %vm679_vm12, %vm587_vm15 }
  0xe2   : > { %v879_v59 = vpop.permute.xlu1 %878  ;;  %v692_v27 = vsel %vm520_vm10, %v2621_v21, 0.0  ;;  %v693_v47 = vsel %vm2739_vm4, %v2623_v22, 0.0  ;;  %v806_v21 = vsel %vm804_vm5, %v803_v31, %v801_v16  ;;  %v852_v24 = vadd.f32 %v850_v54, %v831_v40  ;;  %vm2789_vm10 = vmand %vm547_vm3, %vm1018_vm1 }
  0xe3   : > { %v2712_v41 = vpop.permute.xlu0 %903  ;;  %v2728_v46 = vadd.f32 %v1063_v51, %v2563_v56  ;;  %v2730_v60 = vadd.f32 %v1064_v58, %v1038_v48  ;;  %v646_v56 = vmul.f32 %v2581_v8, %v2418_v3  ;;  %v851_v48 = vadd.f32 %v849_v63, %v2571_v62 }
  0xe4   : > { %v1074_v62 = vmul.f32 %v2590_v12, %v2418_v3  ;;  %v1075_v8 = vmul.f32 %v2590_v12, %v2425_v5  ;;  %v1119_v12 = vsel %vm2754_vm6, %v2609_v18, 0.0  ;;  %v714_v16 = vsel %vm679_vm12, %v2596_v14, 0.0 }
  0xe5   : > { %v899_v31 = vsel %vm756_vm9, %v750_v52, 0.0  ;;  %v735_v18 = vsel %vm2773_vm8, %v2654_v39, 0.0  ;;  %v862_v6 = vadd.f32 %v860_v53, %v851_v48  ;;  %v874_v37 = vsel %vm811_vm2, %v805_v35, 0.0 }
  0xe6   : > { %v2743_v49 = vpop.permute.xlu1 %717  ;;  %v875_v14 = vsel %vm812_vm14, %v806_v21, 0.0  ;;  %v1161_v50 = vsel %vm2789_vm10, %v2680_v4, 0.0  ;;  %v699_v57 = vmul.f32 %v2689_v20, %v692_v27  ;;  %v863_v40 = vadd.f32 %v861_v30, %v852_v24 }
  0xe7   : > { %v651_v0 = vpop.permute.xlu0 %650  ;;  %v881_v42 = vmul.f32 %v879_v59, %v874_v37  ;;  %v882_v38 = vmul.f32 %v879_v59, %v875_v14  ;;  %v700_v44 = vmul.f32 %v2689_v20, %v693_v47  ;;  %v1126_v39 = vmul.f32 %v2699_v32, %v1119_v12 }
  0xe8   : > { %v1127_v58 = vmul.f32 0.0, %v2699_v32  ;;  %v648_v4 = vadd.f32 %v646_v56, %v2701_v33  ;;  %v649_v20 = vadd.f32 %v647_v11, %v2703_v34  ;;  %v941_v63 = vsel %vm811_vm2, %v806_v21, 0.0 }
  0xe9   : > { %v907_v32 = vmul.f32 0.0, %v2712_v41  ;;  %v883_v33 = vadd.f32 %v881_v42, %v862_v6  ;;  %v884_v28 = vadd.f32 %v882_v38, %v863_v40  ;;  %v1077_v11 = vadd.f32 %v1075_v8, %v2730_v60 }
  0xea   : > { %v2783_v22 = vpop.permute.xlu1 %1144  ;;  %v720_v1 = vmul.f32 %v2743_v49, %v2627_v25  ;;  %vm1219_vm5 = vcmask 162816  }
  0xeb   : > { %v1079_v19 = vpop.permute.xlu0 %1078  ;;  %v1147_v37 = vmul.f32 %v2783_v22, %v1140_v29 }
  0xee   : > { %v653_v43 = vpop.permute.xlu1 %652 }
  0xef   : > { %v739_v45 = vpop.permute.xlu0 %738  ;;  %v655_v35 = vsel %vm654_vm11, %v651_v0, %v653_v43  ;;  %v656_v51 = vsel %vm654_vm11, %v653_v43, %v651_v0  ;;  %v906_v0 = vmul.f32 %v2712_v41, %v899_v31  ;;  %vm2320_vm11 = vmmov 1  }
  0xf0   : > { %v667_v52 = vsel %vm586_vm13, %v655_v35, 0.0  ;;  %v668_v55 = vsel %vm587_vm15, %v656_v51, 0.0  ;;  %v741_v10 = vmul.f32 %v739_v45, %v734_v36  ;;  %v742_v8 = vmul.f32 %v739_v45, %v735_v18 }
  0xf1   : > { %v674_v59 = vmul.f32 %v2684_v15, %v667_v52  ;;  %v675_v2 = vmul.f32 %v2684_v15, %v668_v55  ;;  %v1076_v15 = vadd.f32 %v1074_v62, %v2728_v46  ;;  %v721_v46 = vmul.f32 %v2743_v49, %v714_v16 }
  0xf2   : > { %v1081_v56 = vpop.permute.xlu1 %1080  ;;  %v908_v60 = vadd.f32 %v906_v0, %v883_v33  ;;  %v909_v62 = vadd.f32 %v907_v32, %v884_v28 }
  0xf3   : > { %v676_v54 = vadd.f32 %v674_v59, %v648_v4  ;;  %v677_v7 = vadd.f32 %v675_v2, %v649_v20  ;;  %v1083_v48 = vsel %vm1082_vm0, %v1079_v19, %v1081_v56  ;;  %v1084_v34 = vsel %vm1082_vm0, %v1081_v56, %v1079_v19  ;;  %v1166_v21 = vpop.permute.xlu0 %1165 }
  0xf4   : > { %v1095_v27 = vsel %vm1018_vm1, %v1083_v48, 0.0  ;;  %v1096_v41 = vsel %vm1019_vm7, %v1084_v34, 0.0  ;;  %v1169_v49 = vmul.f32 0.0, %v1166_v21  ;;  %vm3140_vm0 = vcmask 1043456   ;;  %v1199_v48 = vld [vmem:[%s3116_s2 + $0x8] sm:$0xff] }
  0xf5   : > { %v701_v47 = vadd.f32 %v699_v57, %v676_v54  ;;  %v702_v23 = vadd.f32 %v700_v44, %v677_v7  ;;  %v1102_v24 = vmul.f32 %v2686_v17, %v1095_v27  ;;  %v1103_v26 = vmul.f32 %v2686_v17, %v1096_v41  ;;  %vm3141_vm3 = vmmov %vm3140_vm0  ;;  %v1198_v7 = vld [vmem:[%s3116_s2] sm:$0xff]  ;;  %v1200_v34 = vld [vmem:[%s3116_s2 + $0x10] sm:$0xf] }
  0xf6   : > { %v925_v19 = vpop.permute.xlu1 %924  ;;  %v1148_v17 = vmul.f32 0.0, %v2783_v22  ;;  %v1168_v57 = vmul.f32 %v1166_v21, %v1161_v50  ;;  %vm3142_vm13 = vmmov %vm3140_vm0 }
  0xf7   : > { %v1104_v53 = vadd.f32 %v1102_v24, %v1076_v15  ;;  %v1105_v9 = vadd.f32 %v1103_v26, %v1077_v11  ;;  %v927_v12 = vmul.f32 %v925_v19, %v2425_v5  ;;  %v928_v30 = vmul.f32 0.0, %v925_v19  ;;  %v500_v36 = vpop.permute.xlu0 %499  ;;  %vm3143_vm15 = vmmov %vm3140_vm0  ;;  %v1330_v15 = vld [vmem:[%s3119_s5] sm:$0xf] }
  0xf8   : > { %v723_v31 = vadd.f32 %v721_v46, %v702_v23  ;;  %v722_v6 = vadd.f32 %v720_v1, %v701_v47  ;;  %v505_v22 = vmul.f32 %v500_v36, %v2418_v3  ;;  %vm3144_vm7 = vmmov %vm3140_vm0 }
  0xf9   : > { %v1128_v14 = vadd.f32 %v1126_v39, %v1104_v53  ;;  %v1129_v25 = vadd.f32 %v1127_v58, %v1105_v9  ;;  %v929_v45 = vadd.f32 %v927_v12, %v908_v60  ;;  %v930_v35 = vadd.f32 %v928_v30, %v909_v62  ;;  %vm3145_vm14 = vmmov %vm3140_vm0 }
  0xfa   : > { %v946_v16 = vpop.permute.xlu1 %945  ;;  %v744_v40 = vadd.f32 %v742_v8, %v723_v31  ;;  %v743_v42 = vadd.f32 %v741_v10, %v722_v6  ;;  %v506_v39 = vmul.f32 %v2425_v5, %v500_v36  ;;  %vm3146_vm9 = vmmov %vm3140_vm0 }
  0xfb   : > { %v948_v18 = vmul.f32 %v946_v16, %v941_v63  ;;  %v949_v38 = vmul.f32 0.0, %v946_v16  ;;  %v1150_v43 = vadd.f32 %v1148_v17, %v1129_v25  ;;  %v1149_v44 = vadd.f32 %v1147_v37, %v1128_v14  ;;  %v1207_v23 = vpop.permute.xlu0 %1206  ;;  %vm3147_vm12 = vmmov %vm3140_vm0 }
  0xfc   : > { %v1184_v4 = vrot.slane %v744_v40, 4  ;;  %v1183_v29 = vrot.slane %v743_v42, 4  ;;  %vm3148_vm4 = vmmov %vm3140_vm0 }
  0xfd   : > { %v1171_v51 = vadd.f32 %v1169_v49, %v1150_v43  ;;  %v1170_v52 = vadd.f32 %v1168_v57, %v1149_v44  ;;  %v950_v50 = vadd.f32 %v948_v18, %v929_v45  ;;  %v951_v58 = vadd.f32 %v949_v38, %v930_v35  ;;  %vm3149_vm2 = vmmov %vm3140_vm0 }
  0xfe   : > { %v1177_v59 = vpop.permute.xlu1 %1176  ;;  %v1195_v2 = vsel %vm3140_vm0, %v506_v39, %v1184_v4  ;;  %v1194_v0 = vsel %vm3142_vm13, %v505_v22, %v1183_v29  ;;  %vm3150_vm1 = vmmov %vm3140_vm0  ;;  %v1439_v22 = vld [vmem:[%s3120_s6 + $0x8] sm:$0xff]  ;;  %v1438_v39 = vld [vmem:[%s3120_s6] sm:$0xff]  ;;  %vm1653_vm13 = vcmask 1045504  }
  0xff   : > { %v1190_v55 = vrot.slane %v1171_v51, 4  ;;  %v1189_v20 = vrot.slane %v1170_v52, 4  ;;  %v1180_v56 = vmul.f32 %v1177_v59, %v2425_v5  ;;  %v1179_v54 = vmul.f32 %v1177_v59, %v2418_v3  ;;  %v1217_v12 = vpop.permute.xlu0 %1216  ;;  %vm3151_vm6 = vmmov %vm3140_vm0  ;;  %v1444_v59 = vld [vmem:[%s3120_s6 + $0x30] sm:$0x1] }
 0x100   : > { %vm3152_vm8 = vmmov %vm3140_vm0  ;;  %vm1487_vm0 = vcmask 228352  }
 0x101   : > { %v1197_v63 = vsel %vm3141_vm3, %v951_v58, %v1190_v55  ;;  %v1196_v32 = vsel %vm3143_vm15, %v950_v50, %v1189_v20  ;;  %vm2912_vm10 = vmpackc.low %vm3152_vm8, %vm2320_vm11  ;;  %v1440_v50 = vld [vmem:[%s3120_s6 + $0x10] sm:$0xff]  ;;  %v1441_v58 = vld [vmem:[%s3120_s6 + $0x18] sm:$0xff]  ;;  %vm1618_vm3 = vcmask 1040384   ;;  %vm1667_vm15 = vcmask 113664  }
 0x102   : > { %v2200_v33 = vpack.c.bf16 %v1197_v63, %v1195_v2  ;;  %v2202_v28 = vpack.c.bf16 %v1196_v32, %v1194_v0  ;;  %v1212_v46 = vpop.permute.xlu1 %1211  ;;  %v1442_v55 = vld [vmem:[%s3120_s6 + $0x20] sm:$0xff]  ;;  %v1443_v20 = vld [vmem:[%s3120_s6 + $0x28] sm:$0xff] }
 0x104   : > { %2201 = vmatprep.subr.bf16.mxu0 %v2200_v33 }
 0x105   : > { %2203 = vmatpush1.bf16.msra.mxu0 %v2202_v28 }
 0x106   : > { %2143 = vmatprep.subr.msk.mxu0 %vm3144_vm7, %v1180_v56  ;;  %vm2215_vm7 = vmpackc.low %vm1653_vm13, %vm2320_vm11 }
 0x109   : > { %2144 = vmatpush1.msk.msra.mxu0 %vm3145_vm14, %v1179_v54  ;;  %vm1774_vm14 = vcmask 3072  }
 0x10a   : > { %2145 = vmatmul.mubr.msk.f32.vlgmr.msra.gmra.mrb[0].mxu0 %vm1219_vm5, %v1198_v7 }
 0x10b   : > { %1305 = vmatprep.mubr.f32.mxu0 %v2307_v13 }
 0x10e   : > { %2146 = vmatmul.mubr.msk.f32.gmra.mrb[2].mxu0 %vm1219_vm5, %v1199_v48 }
 0x10f   : > { %1311 = vmatprep.mubr.f32.mxu0 %v2307_v13 }
 0x112   : > { %2147 = vmatmul.mubr.msk.f32.gmra.mrb[4].mxu0 %vm1219_vm5, %v1200_v34  ;;  %v1485_v34 = vpop.permute.xlu0 %1484  ;;  %vm1768_vm5 = vcmask 7168  }
 0x113   : > { %1575 = vmatprep.mubr.f32.mxu0 %v2307_v13 }
 0x178   : > { %v1404_v11 = vpop.f32.mrb[0].mxu1 }
 0x179   : > { %v1405_v27 = vadd.f32 %v1404_v11, %v1330_v15  ;;  %v2189_v41 = vpop.f32.mrb[1].mxu1 }
 0x17b   : > { %v1408_v47 = vmax.f32 %v1405_v27, 0.0 }
 0x17d   : > { %1411 = vperm.xlu1 %2258, %v1408_v47  }
 0x1dd   : > { %v1301_v21 = vpop.f32.mrb[0].mxu0 }
 0x1de   : > { %v1302_v24 = vadd.f32 %v1301_v21, %v1207_v23  ;;  %v1303_v26 = vpop.f32.mrb[1].mxu0 }
 0x1df   : > { %v1304_v1 = vadd.f32 %v1303_v26, %v1207_v23 }
 0x1e0   : > { %v1318_v62 = vmax.f32 %v1302_v24, 0.0  ;;  %v1445_v24 = vld [vmem:[%s3121_s7] sm:$0xff] }
 0x1e1   : > { %v1319_v19 = vmax.f32 %v1304_v1, 0.0  ;;  %v1307_v60 = vpop.f32.mrb[2].mxu0 }
 0x1e2   : > { %v1308_v10 = vadd.f32 %v1307_v60, %v1212_v46  ;;  %v1309_v8 = vpop.f32.mrb[3].mxu0  ;;  %v1420_v37 = vrot.slane %v1318_v62, 4 }
 0x1e3   : > { %v1310_v53 = vadd.f32 %v1309_v8, %v1212_v46  ;;  %v1421_v30 = vrot.slane %v1319_v19, 4 }
 0x1e4   : > { %v1320_v9 = vmax.f32 %v1308_v10, 0.0  ;;  %v2896_v38 = vsel %vm3149_vm2, %v2418_v3, %v1420_v37 }
 0x1e5   : > { %v1321_v31 = vmax.f32 %v1310_v53, 0.0  ;;  %v1313_v6 = vpop.f32.mrb[4].mxu0  ;;  %v2892_v18 = vsel %vm3148_vm4, %v2425_v5, %v1421_v30 }
 0x1e6   : > { %v1422_v17 = vrot.slane %v1320_v9, 4  ;;  %v1314_v14 = vadd.f32 %v1313_v6, %v1217_v12  ;;  %v1315_v25 = vpop.f32.mrb[5].mxu0 }
 0x1e7   : > { %v1424_v57 = vrot.slane %v1321_v31, 4  ;;  %v1316_v49 = vadd.f32 %v1315_v25, %v1217_v12  ;;  %v1446_v31 = vld [vmem:[%s3121_s7 + $0x8] sm:$0xff] }
 0x1e8   : > { %v2885_v16 = vsel %vm3146_vm9, %v1420_v37, %v1422_v17  ;;  %v1322_v40 = vmax.f32 %v1314_v14, 0.0  ;;  %v1639_v37 = vshrl.u32 %v469_v61, 7 }
 0x1e9   : > { %v1323_v42 = vmax.f32 %v1316_v49, 0.0  ;;  %v2888_v36 = vsel %vm3147_vm12, %v1421_v30, %v1424_v57  ;;  %v2206_v45 = vpack.c.bf16 %v2885_v16, %v2896_v38 }
 0x1ea   : > { %v1426_v43 = vrot.slane %v1322_v40, 4  ;;  %v2204_v44 = vpack.c.bf16 %v2888_v36, %v2892_v18  ;;  %v1640_v14 = vsub.s32 0, %v1639_v37 }
 0x1eb   : > { %v1428_v35 = vrot.slane %v1323_v42, 4 }
 0x1ec   : > { %v2903_v51 = vsel %vm3150_vm1, %v1422_v17, %v1426_v43  ;;  %2205 = vmatprep.subr.bf16.mxu0 %v2204_v44  ;;  %2230 = vmatprep.subr.bf16.mxu1 %v2204_v44 }
 0x1ed   : > { %v2906_v5 = vsel %vm3151_vm6, %v1424_v57, %v1428_v35  ;;  %2207 = vmatpush1.bf16.msra.mxu0 %v2206_v45  ;;  %2232 = vmatpush1.bf16.msra.mxu1 %v2206_v45 }
 0x1fc   : > { %v2908_v3 = vpop.permute.xlu1 %1411 }
 0x1fd   : > { %v2208_v52 = vpack.c.bf16 %v2908_v3, %v2906_v5  ;;  %v2211_v29 = vpack.c.bf16 %v2908_v3, %v2903_v51 }
 0x1ff   : > { %2210 = vmatprep.subr.msk.bf16.mxu0 %vm2912_vm10, %v2208_v52  ;;  %2231 = vmatprep.subr.msk.bf16.mxu1 %vm2912_vm10, %v2208_v52 }
 0x200   : > { %2213 = vmatpush1.bf16.msk.msra.mxu0 %vm2912_vm10, %v2211_v29  ;;  %2233 = vmatpush1.bf16.msk.msra.mxu1 %vm2912_vm10, %v2211_v29 }
 0x203   : > { %2153 = vmatmul.mubr.msk.f32.vlgmr.msra.gmra.mrb[2].mxu1 %vm1487_vm0, %v1439_v22  ;;  %2152 = vmatmul.mubr.msk.f32.vlgmr.msra.gmra.mrb[6].mxu0 %vm1487_vm0, %v1438_v39 }
 0x204   : > { %1587 = vmatprep.mubr.f32.mxu1 %v2307_v13 }
 0x207   : > { %2154 = vmatmul.mubr.msk.f32.gmra.mrb[4].mxu1 %vm1487_vm0, %v1440_v50 }
 0x208   : > { %1593 = vmatprep.mubr.f32.mxu1 %v2307_v13 }
 0x20b   : > { %2155 = vmatmul.mubr.msk.f32.gmra.mrb[6].mxu1 %vm1487_vm0, %v1441_v58 }
 0x20c   : > { %1599 = vmatprep.mubr.f32.mxu1 %v2307_v13 }
 0x20f   : > { %2156 = vmatmul.mubr.msk.f32.gmra.mrb[8].mxu1 %vm1487_vm0, %v1442_v55 }
 0x210   : > { %1605 = vmatprep.mubr.f32.mxu1 %v2307_v13 }
 0x213   : > { %2157 = vmatmul.mubr.msk.f32.gmra.mrb[10].mxu1 %vm1487_vm0, %v1443_v20 }
 0x214   : > { %1611 = vmatprep.mubr.f32.mxu1 %v2307_v13 }
 0x217   : > { %2158 = vmatmul.mubr.msk.f32.gmra.mrb[12].mxu1 %vm1487_vm0, %v1444_v59  ;;  %v1449_v59 = vld [vmem:[%s3121_s7 + $0x20] sm:$0xff] }
 0x2d6   : > { %v1583_v2 = vpop.f32.mrb[2].mxu1  ;;  %v1577_v26 = vpop.f32.mrb[6].mxu0 }
 0x2d7   : > { %v1585_v63 = vpop.f32.mrb[3].mxu1  ;;  %v1579_v1 = vpop.f32.mrb[7].mxu0 }
 0x2da   : > { %v2961_v0 = vpop.f32.mrb[4].mxu1 }
 0x2db   : > { %v2963_v32 = vpop.f32.mrb[5].mxu1 }
 0x2de   : > { %v2965_v33 = vpop.f32.mrb[6].mxu1 }
 0x2df   : > { %v2967_v28 = vpop.f32.mrb[7].mxu1 }
 0x2e2   : > { %v2969_v56 = vpop.f32.mrb[8].mxu1 }
 0x2e3   : > { %v2971_v54 = vpop.f32.mrb[9].mxu1 }
 0x2e6   : > { %v2973_v7 = vpop.f32.mrb[10].mxu1 }
 0x2e7   : > { %v2975_v48 = vpop.f32.mrb[11].mxu1 }
 0x2ea   : > { %v1613_v15 = vpop.f32.mrb[12].mxu1 }
 0x2eb   : > { %v1614_v11 = vadd.f32 %v1613_v15, %v1485_v34  ;;  %v1615_v27 = vpop.f32.mrb[13].mxu1 }
 0x2ec   : > { %v1616_v41 = vadd.f32 %v1615_v27, %v1485_v34 }
 0x2ed   : > { %v1619_v47 = vsel %vm1618_vm3, %v1614_v11, -inf }
 0x2ee   : > { %v1620_v23 = vsel %vm1618_vm3, %v1616_v41, -inf }
 0x2ef   : > { %v1621_v21 = vmax.f32 %v1619_v47, %v1620_v23  ;;  %v1660_v23 = vld [vmem:[%s3122_s8 + $0x8] sm:$0xff] }
 0x2f1   : > { %1622 = vmax.xlane.f32.xlu1 %v1621_v21  ;;  %v1661_v21 = vld [vmem:[%s3122_s8 + $0x10] sm:$0xff] }
 0x302   : > { %1454 = vperm.xlu1 %2258, %v1445_v24  }
 0x37e   : > { %v1623_v46 = vpop.xlane.xlu1 %1622 }
 0x37f   : > { %v1624_v19 = vsub.f32 %v1614_v11, %v1623_v46  ;;  %v1625_v60 = vsub.f32 %v1616_v41, %v1623_v46 }
 0x381   : > { %v1626_v62 = vmul.f32 1.442695, %v1624_v19  ;;  %v1628_v10 = vmul.f32 1.442695, %v1625_v60 }
 0x382   : > { %v1455_v17 = vpop.permute.xlu1 %1454 }
 0x383   : > { %2260 = vpow2.f32 %v1626_v62  ;;  %v1578_v42 = vadd.f32 %v1577_v26, %v1455_v17  ;;  %v1580_v43 = vadd.f32 %v1579_v1, %v1455_v17  ;;  %v1448_v62 = vld [vmem:[%s3121_s7 + $0x18] sm:$0xff] }
 0x384   : > { %2262 = vpow2.f32 %v1628_v10 }
 0x38d   : > { %v2261_v8 = vpop.eup %2260 }
 0x38e   : > { %v2263_v53 = vpop.eup %2262  ;;  %v1630_v9 = vsel %vm1618_vm3, %v2261_v8, 0.0 }
 0x38f   : > { %v1631_v12 = vsel %vm1618_vm3, %v2263_v53, 0.0 }
 0x390   : > { %v1632_v30 = vadd.f32 %v1631_v12, %v1630_v9 }
 0x392   : > { %1633 = vadd.xlane.f32.xlu0 %v1632_v30 }
 0x3a8   : > { %1459 = vperm.xlu0 %2257, %v1446_v31  }
 0x41f   : > { %v1634_v6 = vpop.xlane.xlu0 %1633 }
 0x420   : > { %2264 = vrcp.f32 %v1634_v6 }
 0x427   : > { %v1460_v57 = vpop.permute.xlu0 %1459 }
 0x428   : > { %v1584_v35 = vadd.f32 %v1583_v2, %v1460_v57  ;;  %v1586_v52 = vadd.f32 %v1585_v63, %v1460_v57  ;;  %v1659_v2 = vld [vmem:[%s3122_s8] sm:$0xff]  ;;  %v1450_v63 = vld [vmem:[%s3121_s7 + $0x28] sm:$0xff] }
 0x429   : > { %2194 = vmatprep.mubr.msk.f32.mxu0 %vm1667_vm15, %v1659_v2 }
 0x42a   : > { %v2265_v25 = vpop.eup %2264 }
 0x42b   : > { %v1636_v49 = vmul.f32 %v2265_v25, %v2261_v8  ;;  %v1637_v40 = vmul.f32 %v2265_v25, %v2263_v53 }
 0x42d   : > { %v1641_v44 = vrot.slane %v1636_v49, %v1640_v14  ;;  %v1645_v45 = vrot.slane %v1637_v40, %v1640_v14 }
 0x42f   : > { %v1648_v29 = vmul.f32 %v1641_v44, %v1584_v35  ;;  %v1649_v22 = vmul.f32 %v1645_v45, %v1586_v52  ;;  %v1646_v39 = vmul.f32 %v1641_v44, %v1578_v42  ;;  %v1647_v50 = vmul.f32 %v1645_v45, %v1580_v43 }
 0x431   : > { %v1650_v58 = vadd.f32 %v1647_v50, %v1646_v39  ;;  %v1654_v61 = vsel %vm1653_vm13, %v1648_v29, 0.0  ;;  %v1655_v55 = vsel %vm1653_vm13, %v1649_v22, 0.0 }
 0x432   : > { %v1656_v20 = vadd.f32 %v1655_v55, %v1654_v61 }
 0x433   : > { %1651 = vadd.xlane.f32.xlu1 %v1650_v58 }
 0x434   : > { %1657 = vadd.xlane.f32.xlu0 %v1656_v20 }
 0x444   : > { %1474 = vperm.xlu1 %2258, %v1449_v59  }
 0x44a   : > { %1479 = vperm.xlu0 %2257, %v1450_v63  }
 0x4c0   : > { %v1652_v34 = vpop.xlane.xlu1 %1651 }
 0x4c1   : > { %v1658_v15 = vpop.xlane.xlu0 %1657 }
 0x4c2   : > { %v2214_v11 = vpack.c.bf16 %v1658_v15, %v1652_v34  ;;  %v1664_v15 = vld [vmem:[%s3123_s9 + $0x8] sm:$0xff] }
 0x4c4   : > { %2216 = vmatprep.subr.msk.bf16.mxu0 %vm2215_vm7, %v2214_v11  ;;  %v1475_v27 = vpop.permute.xlu1 %1474 }
 0x4c5   : > { %v1602_v41 = vadd.f32 %v2969_v56, %v1475_v27  ;;  %v1604_v47 = vadd.f32 %v2971_v54, %v1475_v27  ;;  %2219 = vmatpush3.bf16.msk.msra.mxu0 %vm2215_vm7, %v2214_v11  ;;  %v1662_v56 = vld [vmem:[%s3122_s8 + $0x18] sm:$0xf] }
 0x4c7   : > { %v1853_v24 = vadd.f32 %v1604_v47, %v1602_v41 }
 0x4c8   : > { %2195 = vmatmul.mubr.msk.f32.vlgmr.msra.gmra.mrb[8].mxu0 %vm1667_vm15, %v1660_v23 }
 0x4c9   : > { %v1480_v26 = vpop.permute.xlu0 %1479  ;;  %1854 = vadd.xlane.f32.xlu0 %v1853_v24  ;;  %2197 = vmatprep.mubr.msk.f32.mxu0 %vm1667_vm15, %v1661_v21 }
 0x4ca   : > { %v1608_v54 = vadd.f32 %v2973_v7, %v1480_v26  ;;  %v1610_v1 = vadd.f32 %v2975_v48, %v1480_v26  ;;  %v1447_v7 = vld [vmem:[%s3121_s7 + $0x10] sm:$0xff] }
 0x4cc   : > { %2198 = vmatmul.mubr.msk.f32.gmra.mrb[10].mxu0 %vm1667_vm15, %v1662_v56  ;;  %v1856_v46 = vsel %vm1653_vm13, %v1608_v54, 0.0  ;;  %v1857_v19 = vsel %vm1653_vm13, %v1610_v1, 0.0  ;;  %v1666_v1 = vld [vmem:[%s3123_s9 + $0x18] sm:$0xf] }
 0x4cd   : > { %v1858_v60 = vadd.f32 %v1857_v19, %v1856_v46  ;;  %2037 = vmatprep.mubr.f32.mxu0 %v2307_v13  ;;  %v1665_v46 = vld [vmem:[%s3123_s9 + $0x10] sm:$0xff] }
 0x4cf   : > { %1859 = vadd.xlane.f32.xlu1 %v1858_v60 }
 0x4df   : > { %1469 = vperm.xlu0 %2257, %v1448_v62  }
 0x4e0   : > { %1464 = vperm.xlu1 %2258, %v1447_v7  }
 0x556   : > { %v1855_v48 = vpop.xlane.xlu0 %1854 }
 0x557   : > { %v1862_v53 = vmul.f32 0.00390625, %v1855_v48 }
 0x55c   : > { %v1860_v10 = vpop.xlane.xlu1 %1859 }
 0x55d   : > { %v1863_v8 = vmul.f32 0.00390625, %v1860_v10 }
 0x55e   : > { %v1470_v50 = vpop.permute.xlu0 %1469 }
 0x55f   : > { %v1864_v9 = vsel %vm1653_vm13, %v1863_v8, -inf  ;;  %v1596_v55 = vadd.f32 %v2965_v33, %v1470_v50  ;;  %v1598_v20 = vadd.f32 %v2967_v28, %v1470_v50  ;;  %v1663_v33 = vld [vmem:[%s3123_s9] sm:$0xff] }
 0x560   : > { %v1865_v12 = vmax.f32 %v1862_v53, %v1864_v9  ;;  %v1465_v58 = vpop.permute.xlu1 %1464 }
 0x561   : > { %v1590_v63 = vadd.f32 %v2961_v0, %v1465_v58  ;;  %v1592_v34 = vadd.f32 %v2963_v32, %v1465_v58 }
 0x562   : > { %v1866_v30 = vrot.slane %v1865_v12, 4 }
 0x564   : > { %v1867_v13 = vmax.f32 %v1865_v12, %v1866_v30 }
 0x566   : > { %v1868_v31 = vrot.slane %v1867_v13, 2 }
 0x568   : > { %v1869_v6 = vmax.f32 %v1867_v13, %v1868_v31 }
 0x56a   : > { %v1870_v37 = vrot.slane %v1869_v6, 1 }
 0x56c   : > { %v1871_v17 = vmax.f32 %v1869_v6, %v1870_v37 }
 0x56e   : > { %v1872_v14 = vsub.f32 %v1862_v53, %v1871_v17  ;;  %v1873_v25 = vsub.f32 %v1863_v8, %v1871_v17 }
 0x570   : > { %v1874_v57 = vmul.f32 1.442695, %v1872_v14  ;;  %v1876_v49 = vmul.f32 1.442695, %v1873_v25 }
 0x572   : > { %2266 = vpow2.f32 %v1874_v57 }
 0x573   : > { %2268 = vpow2.f32 %v1876_v49 }
 0x57c   : > { %v2267_v40 = vpop.eup %2266 }
 0x57d   : > { %v2269_v42 = vpop.eup %2268 }
 0x57e   : > { %v1878_v43 = vsel %vm1653_vm13, %v2269_v42, 0.0 }
 0x57f   : > { %v1879_v44 = vadd.f32 %v2267_v40, %v1878_v43 }
 0x581   : > { %v1880_v45 = vrot.slane %v1879_v44, 4 }
 0x583   : > { %v1881_v35 = vadd.f32 %v1880_v45, %v1879_v44 }
 0x585   : > { %v1882_v52 = vrot.slane %v1881_v35, 2 }
 0x587   : > { %v1883_v29 = vadd.f32 %v1882_v52, %v1881_v35 }
 0x589   : > { %v1884_v22 = vrot.slane %v1883_v29, 1 }
 0x58b   : > { %v1885_v39 = vadd.f32 %v1884_v22, %v1883_v29 }
 0x58d   : > { %2270 = vrcp.f32 %v1885_v39 }
 0x597   : > { %v2271_v61 = vpop.eup %2270 }
 0x598   : > { %v1888_v59 = vmul.f32 %v2271_v61, %v2269_v42  ;;  %v1887_v2 = vmul.f32 %v2271_v61, %v2267_v40 }
 0x59a   : > { %v1891_v11 = vmul.f32 %v1888_v59, %v1596_v55  ;;  %v1892_v27 = vmul.f32 %v1888_v59, %v1598_v20  ;;  %v1889_v41 = vmul.f32 %v1887_v2, %v1590_v63  ;;  %v1890_v47 = vmul.f32 %v1887_v2, %v1592_v34 }
 0x59b   : > { %v2196_v23 = vpop.f32.mrb[8].mxu0 }
 0x59c   : > { %v1893_v28 = vsel %vm1653_vm13, %v1891_v11, 0.0  ;;  %v1901_v0 = vsel %vm1653_vm13, %v1892_v27, 0.0  ;;  %v1755_v21 = vadd.f32 %v2196_v23, %v1664_v15  ;;  %v1749_v32 = vpop.f32.mrb[9].mxu0  ;;  %v1813_v11 = vld [vmem:[%s3124_s10] sm:$0xff] }
 0x59d   : > { %v3041_v24 = vadd.f32 %v1893_v28, %v1889_v41  ;;  %v3043_v26 = vadd.f32 %v1901_v0, %v1890_v47  ;;  %v1750_v56 = vadd.f32 %v1749_v32, %v1663_v33  ;;  %v1814_v41 = vld [vmem:[%s3124_s10 + $0x8] sm:$0xff]  ;;  %v1815_v47 = vld [vmem:[%s3124_s10 + $0x10] sm:$0xff]  ;;  %v1816_v33 = vld [vmem:[%s3124_s10 + $0x18] sm:$0xf] }
 0x59e   : > { %v1770_v54 = vsel %vm1768_vm5, %v1755_v21, 0.0  ;;  %v1821_v32 = vld [vmem:[%s3125_s11] sm:$0xff] }
 0x59f   : > { %v1769_v19 = vsel %vm1768_vm5, %v1750_v56, 0.0  ;;  %v2199_v60 = vpop.f32.mrb[10].mxu0 }
 0x5a0   : > { %v1771_v62 = vadd.f32 %v1770_v54, %v1769_v19  ;;  %v1759_v7 = vpop.f32.mrb[11].mxu0  ;;  %v1765_v48 = vadd.f32 %v2199_v60, %v1666_v1  ;;  %v1823_v54 = vld [vmem:[%s3125_s11 + $0x10] sm:$0xff]  ;;  %v1824_v1 = vld [vmem:[%s3125_s11 + $0x18] sm:$0xf] }
 0x5a1   : > { %v1760_v10 = vadd.f32 %v1759_v7, %v1665_v46 }
 0x5a2   : > { %v1775_v9 = vsel %vm1774_vm14, %v1765_v48, 0.0 }
 0x5a3   : > { %v1772_v8 = vsel %vm1768_vm5, %v1760_v10, 0.0 }
 0x5a4   : > { %v1773_v53 = vadd.f32 %v1772_v8, %v1771_v62 }
 0x5a6   : > { %v1776_v12 = vadd.f32 %v1775_v9, %v1773_v53 }
 0x5a8   : > { %v1777_v30 = vrot.slane %v1776_v12, 4 }
 0x5aa   : > { %v1778_v13 = vadd.f32 %v1777_v30, %v1776_v12 }
 0x5ac   : > { %v1779_v31 = vrot.slane %v1778_v13, 2 }
 0x5ae   : > { %v1780_v6 = vadd.f32 %v1779_v31, %v1778_v13 }
 0x5b0   : > { %v1781_v37 = vrot.slane %v1780_v6, 1 }
 0x5b2   : > { %v1782_v17 = vadd.f32 %v1781_v37, %v1780_v6 }
 0x5b4   : > { %v1784_v14 = vmul.f32 0.035714287, %v1782_v17 }
 0x5b6   : > { %v1785_v25 = vsub.f32 %v1750_v56, %v1784_v14  ;;  %v1786_v57 = vsub.f32 %v1755_v21, %v1784_v14  ;;  %v1787_v49 = vsub.f32 %v1760_v10, %v1784_v14  ;;  %v1788_v40 = vsub.f32 %v1765_v48, %v1784_v14  ;;  %v1822_v56 = vld [vmem:[%s3125_s11 + $0x8] sm:$0xff] }
 0x5b8   : > { %v1789_v42 = vmul.f32 %v1785_v25, %v1785_v25  ;;  %v1790_v43 = vmul.f32 %v1786_v57, %v1786_v57  ;;  %v1791_v44 = vmul.f32 %v1787_v49, %v1787_v49  ;;  %v1792_v45 = vmul.f32 %v1788_v40, %v1788_v40 }
 0x5ba   : > { %v1793_v35 = vsel %vm1768_vm5, %v1789_v42, 0.0  ;;  %v1794_v52 = vsel %vm1768_vm5, %v1790_v43, 0.0  ;;  %v1796_v22 = vsel %vm1768_vm5, %v1791_v44, 0.0  ;;  %v1798_v50 = vsel %vm1774_vm14, %v1792_v45, 0.0  ;;  %v1958_v44 = vld [vmem:[%s3127_s13] sm:$0xf] }
 0x5bb   : > { %v1795_v29 = vadd.f32 %v1794_v52, %v1793_v35  ;;  %v1895_v45 = vrot.slane %v3041_v24, 4  ;;  %v1903_v35 = vrot.slane %v3043_v26, 4 }
 0x5bd   : > { %v1797_v39 = vadd.f32 %v1796_v22, %v1795_v29  ;;  %v1896_v52 = vadd.f32 %v1895_v45, %v3041_v24  ;;  %v1904_v29 = vadd.f32 %v1903_v35, %v3043_v26 }
 0x5bf   : > { %v1799_v58 = vadd.f32 %v1798_v50, %v1797_v39  ;;  %v1897_v22 = vrot.slane %v1896_v52, 2  ;;  %v1905_v39 = vrot.slane %v1904_v29, 2 }
 0x5c1   : > { %v1800_v61 = vrot.slane %v1799_v58, 4  ;;  %v1898_v50 = vadd.f32 %v1897_v22, %v1896_v52 }
 0x5c3   : > { %v1801_v55 = vadd.f32 %v1800_v61, %v1799_v58  ;;  %v1906_v58 = vadd.f32 %v1905_v39, %v1904_v29  ;;  %v1899_v61 = vrot.slane %v1898_v50, 1 }
 0x5c5   : > { %v1802_v20 = vrot.slane %v1801_v55, 2 }
 0x5c7   : > { %v1803_v59 = vadd.f32 %v1802_v20, %v1801_v55  ;;  %v1907_v55 = vrot.slane %v1906_v58, 1  ;;  %v1900_v20 = vadd.f32 %v1899_v61, %v1898_v50 }
 0x5c9   : > { %v1804_v2 = vrot.slane %v1803_v59, 1 }
 0x5cb   : > { %v1805_v63 = vadd.f32 %v1804_v2, %v1803_v59  ;;  %v1908_v59 = vadd.f32 %v1907_v55, %v1906_v58  ;;  %v2168_v2 = vmul.f32 -1.442695, %v1900_v20 }
 0x5cd   : > { %v1806_v34 = vmul.f32 0.035714287, %v1805_v63  ;;  %v2169_v63 = vmul.f32 -1.442695, %v1908_v59 }
 0x5cf   : > { %v1807_v15 = vadd.f32 1e-05, %v1806_v34 }
 0x5d1   : > { %2272 = vrsqrt.f32 %v1807_v15 }
 0x5db   : > { %v2273_v27 = vpop.eup %2272 }
 0x5dc   : > { %v1809_v23 = vmul.f32 %v2273_v27, %v1785_v25  ;;  %v1810_v28 = vmul.f32 %v2273_v27, %v1786_v57  ;;  %v1811_v0 = vmul.f32 %v2273_v27, %v1787_v49  ;;  %v1812_v21 = vmul.f32 %v2273_v27, %v1788_v40 }
 0x5de   : > { %v1817_v46 = vmul.f32 %v1813_v11, %v1809_v23  ;;  %v1818_v19 = vmul.f32 %v1814_v41, %v1810_v28  ;;  %v1819_v60 = vmul.f32 %v1815_v47, %v1811_v0  ;;  %v1820_v62 = vmul.f32 %v1816_v33, %v1812_v21 }
 0x5e0   : > { %v1825_v7 = vadd.f32 %v1821_v32, %v1817_v46  ;;  %v1826_v48 = vadd.f32 %v1822_v56, %v1818_v19  ;;  %v1827_v10 = vadd.f32 %v1823_v54, %v1819_v60  ;;  %v1828_v8 = vadd.f32 %v1824_v1, %v1820_v62 }
 0x5e2   : > { %v2164_v53 = vmul.f32 -1.442695, %v1825_v7  ;;  %v2165_v9 = vmul.f32 -1.442695, %v1826_v48  ;;  %v2166_v12 = vmul.f32 -1.442695, %v1827_v10 }
 0x5e3   : > { %v2167_v30 = vmul.f32 -1.442695, %v1828_v8 }
 0x5e4   : > { %2274 = vpow2.f32 %v2164_v53 }
 0x5e5   : > { %2276 = vpow2.f32 %v2165_v9 }
 0x5e6   : > { %2278 = vpow2.f32 %v2166_v12 }
 0x5e7   : > { %2280 = vpow2.f32 %v2167_v30 }
 0x5ee   : > { %v2275_v13 = vpop.eup %2274 }
 0x5ef   : > { %v2277_v31 = vpop.eup %2276  ;;  %v1841_v6 = vadd.f32 1.0, %v2275_v13 }
 0x5f0   : > { %v2279_v37 = vpop.eup %2278  ;;  %v1842_v17 = vadd.f32 1.0, %v2277_v31 }
 0x5f1   : > { %v2281_v14 = vpop.eup %2280  ;;  %v1843_v25 = vadd.f32 1.0, %v2279_v37  ;;  %2282 = vrcp.f32 %v1841_v6 }
 0x5f2   : > { %v1844_v57 = vadd.f32 1.0, %v2281_v14  ;;  %2284 = vrcp.f32 %v1842_v17 }
 0x5f3   : > { %2286 = vrcp.f32 %v1843_v25 }
 0x5f4   : > { %2288 = vrcp.f32 %v1844_v57 }
 0x5f5   : > { %2290 = vpow2.f32 %v2168_v2 }
 0x5f6   : > { %2292 = vpow2.f32 %v2169_v63 }
 0x5fb   : > { %v2283_v49 = vpop.eup %2282 }
 0x5fc   : > { %v2285_v40 = vpop.eup %2284  ;;  %1923 = vperm.xlu1 %2258, %v2283_v49  }
 0x5fd   : > { %1928 = vperm.xlu0 %2257, %v2285_v40   ;;  %v2287_v42 = vpop.eup %2286 }
 0x5fe   : > { %v2289_v43 = vpop.eup %2288 }
 0x5ff   : > { %v2291_v34 = vpop.eup %2290 }
 0x600   : > { %1933 = vperm.xlu1 %2258, %v2287_v42   ;;  %v2293_v15 = vpop.eup %2292  ;;  %v1915_v11 = vadd.f32 1.0, %v2291_v34 }
 0x601   : > { %1938 = vperm.xlu0 %2257, %v2289_v43   ;;  %v1916_v27 = vadd.f32 1.0, %v2293_v15 }
 0x602   : > { %2294 = vrcp.f32 %v1915_v11 }
 0x603   : > { %2296 = vrcp.f32 %v1916_v27 }
 0x604   : > { %1961 = vperm.xlu1 %2258, %v1958_v44  }
 0x60c   : > { %v2295_v24 = vpop.eup %2294 }
 0x60d   : > { %v2297_v26 = vpop.eup %2296 }
 0x67b   : > { %v1924_v41 = vpop.permute.xlu1 %1923 }
 0x67c   : > { %v1929_v47 = vpop.permute.xlu0 %1928  ;;  %v1941_v33 = vadd.f32 %v2295_v24, %v1924_v41  ;;  %v1942_v23 = vadd.f32 %v2297_v26, %v1924_v41 }
 0x67d   : > { %v1943_v28 = vadd.f32 %v2295_v24, %v1929_v47  ;;  %v1944_v0 = vadd.f32 %v2297_v26, %v1929_v47 }
 0x67e   : > { %v1949_v21 = vmul.f32 %v1941_v33, %v2896_v38  ;;  %v1950_v32 = vmul.f32 %v1942_v23, %v2892_v18 }
 0x67f   : > { %v1951_v56 = vmul.f32 %v1943_v28, %v2885_v16  ;;  %v1952_v54 = vmul.f32 %v1944_v0, %v2888_v36  ;;  %v1934_v1 = vpop.permute.xlu1 %1933 }
 0x680   : > { %v1939_v46 = vpop.permute.xlu0 %1938  ;;  %v1945_v19 = vadd.f32 %v2295_v24, %v1934_v1  ;;  %v1946_v60 = vadd.f32 %v2297_v26, %v1934_v1 }
 0x681   : > { %v2222_v62 = vpack.c.bf16 %v1951_v56, %v1949_v21  ;;  %v1947_v7 = vadd.f32 %v2295_v24, %v1939_v46  ;;  %v1948_v48 = vadd.f32 %v2297_v26, %v1939_v46  ;;  %v2220_v10 = vpack.c.bf16 %v1952_v54, %v1950_v32 }
 0x682   : > { %v1953_v8 = vmul.f32 %v1945_v19, %v2903_v51  ;;  %v1954_v53 = vmul.f32 %v1946_v60, %v2906_v5  ;;  %v1957_v51 = vld [vmem:[%s3126_s12] sm:$0xf] }
 0x683   : > { %v1955_v38 = vmul.f32 %v1947_v7, %v2908_v3  ;;  %v1956_v18 = vmul.f32 %v1948_v48, %v2908_v3  ;;  %2221 = vmatprep.subr.bf16.mxu0 %v2220_v10  ;;  %v1962_v5 = vpop.permute.xlu1 %1961 }
 0x684   : > { %2223 = vmatpush1.bf16.msra.mxu0 %v2222_v62 }
 0x685   : > { %v2224_v16 = vpack.c.bf16 %v1956_v18, %v1954_v53  ;;  %v2227_v36 = vpack.c.bf16 %v1955_v38, %v1953_v8 }
 0x687   : > { %2226 = vmatprep.subr.msk.bf16.mxu0 %vm2912_vm10, %v2224_v16 }
 0x688   : > { %2229 = vmatpush1.bf16.msk.msra.mxu0 %vm2912_vm10, %v2227_v36 }
 0x68b   : > { %2172 = vmatmul.mubr.msk.f32.vlgmr.msra.gmra.mrb[12].mxu0 %vm1487_vm0, %v1957_v51 }
 0x75e   : > { %v2039_v9 = vpop.f32.mrb[12].mxu0 }
 0x75f   : > { %v2040_v3 = vadd.f32 %v2039_v9, %v1962_v5  ;;  %v2041_v12 = vpop.f32.mrb[13].mxu0 }
 0x760   : > { %v2042_v30 = vadd.f32 %v2041_v12, %v1962_v5 }
 0x761   : > { %v2044_v13 = vmax.f32 %v2040_v3, 0.0 }
 0x762   : > { %v2045_v31 = vmax.f32 %v2042_v30, 0.0 }
 0x764   : > { %v2048_v4 = vcombine.low %v2044_v13, %v2045_v31 }
 0x766   : > { %2050 = vst [vmem:[%s467_s27] sm:$0xff] %v2048_v4 }
 0x767 PF: > { %s24_s29 = sadd.s32 1, %s2304_s29  }
 0x768   : > { %p21_p4 = scmp.ge.s32.totalorder %s24_s29, 4  }
 0x76a   :  { %23 = sbr.rel (!%p21_p4) target bundleno = 1 (0x1), region = 134 }

</bundles_post_ra>
